<compile_context>
chip_gen: v7x
topology: tpu7x:2x2x1
jax: 0.10.0
libtpu: 0.0.40
codegen_flags: <defaults>
</compile_context>

<pallas_src>
import numpy as np
import jax
import jax.numpy as jnp
from jax.experimental import pallas as pl
from jax.experimental.pallas import tpu as pltpu


# --------------------------------------------------------------------------- #
# Plain-JAX glue: symmetric-matrix spectral functions / SPD logmap
# --------------------------------------------------------------------------- #
def _sym(x):
    return 0.5 * (x + jnp.swapaxes(x, -1, -2))


def _sym_fn(x, fn):
    """Apply a spectral function (exp / log) to a batch of symmetric matrices."""
    w, vecs = jnp.linalg.eigh(x)
    return jnp.einsum("...ij,...j,...kj->...ik", vecs, fn(w), vecs)


def _logmap(p, u):
    """SPD logmap: sqrt(p) @ logm(p^-1/2 @ u @ p^-1/2) @ sqrt(p).

    p: (C, d, d) SPD base points, u: (B, 1, d, d) SPD points -> (B, C, d, d).
    """
    w, vecs = jnp.linalg.eigh(p)
    sqrt_w = jnp.sqrt(w)
    sqrt_p = jnp.einsum("cij,cj,ckj->cik", vecs, sqrt_w, vecs)
    inv_sqrt_p = jnp.einsum("cij,cj,ckj->cik", vecs, 1.0 / sqrt_w, vecs)
    inner = _sym(inv_sqrt_p[None] @ u @ inv_sqrt_p[None])      # (B, C, d, d)
    return sqrt_p[None] @ _sym_fn(inner, jnp.log) @ sqrt_p[None]


def _prepare(node_feats, means, sigma, rows, cols):
    # TODO(synk): matrix exp / log / sqrt require jnp.linalg.eigh, which has no
    # Pallas equivalent; this glue dominates end-to-end time at these shapes and
    # is kept in plain JAX (jitted together with the pallas_call so XLA can
    # schedule/overlap it).
    centroids = _sym_fn(_sym(means), jnp.exp)                  # expmap_id(sym(means))
    tangent = _logmap(centroids, node_feats[:, None])          # (B, C, d, d)
    v = tangent[:, :, rows, cols]                              # (B, C, D) upper-tri vec
    metric = _sym(_sym_fn(_sym(sigma), jnp.exp))               # expmap_id(sym(sigma)), (C, D, D)
    return v.astype(jnp.float32), metric.astype(jnp.float32)


# --------------------------------------------------------------------------- #
# Pallas hot path: fused quadratic forms for all centroids at once
# --------------------------------------------------------------------------- #
def spd_classifier_kernel(v_ref, mblk_ref, seg_ref, bias_ref, out_ref):
    v = v_ref[...]                                                       # (TB, C*D)
    # One lane-dense MXU matmul against the block-diagonal metric.
    t = jnp.dot(v, mblk_ref[...], preferred_element_type=jnp.float32)   # (TB, C*D)
    p = t * v                                                            # VPU
    # Segment-sum over each centroid's D lanes; -0.5 scale folded into seg.
    q = jnp.dot(p, seg_ref[...], preferred_element_type=jnp.float32)    # (TB, C)
    out_ref[...] = q + bias_ref[...]                                     # single (TB, C) store


def spd_logistic_classifier(node_feats, means, sigma, bias, rows, cols):
    B = node_feats.shape[0]
    C, D, _ = sigma.shape
    CD = C * D

    v, metric = _prepare(node_feats, means, sigma, rows, cols)          # (B,C,D), (C,D,D)

    # Fused operands for the kernel (built once in the wrapper, cheap):
    v_flat = v.reshape(B, CD)                                           # (B, C*D)
    eye_c = jnp.eye(C, dtype=jnp.float32)
    # M_block[c*D+d, c'*D+e] = metric[c, d, e] * (c == c')
    m_block = (metric[:, :, None, :] * eye_c[:, None, :, None]).reshape(CD, CD)
    # seg[c*D+d, c] = 1 ; fold the -0.5 scale in here.
    seg_scaled = -0.5 * jnp.repeat(eye_c, D, axis=0)                    # (C*D, C)
    bias2d = bias.reshape(1, C).astype(jnp.float32)

    # Batch tiling: full batch per block at toy sizes; tiled + megacore-parallel
    # when B scales. metric / seg / bias use constant index_maps so they stay
    # VMEM-resident across batch tiles (only x/out stream from HBM).
    tb = B if B <= 512 else 512
    n_blocks = pl.cdiv(B, tb)
    b_pad = n_blocks * tb
    if b_pad != B:
        v_flat = jnp.pad(v_flat, ((0, b_pad - B), (0, 0)))

    out = pl.pallas_call(
        spd_classifier_kernel,
        out_shape=jax.ShapeDtypeStruct((b_pad, C), jnp.float32),
        grid=(n_blocks,),
        in_specs=[
            pl.BlockSpec((tb, CD), lambda i: (i, 0)),     # streamed batch tile
            pl.BlockSpec((CD, CD), lambda i: (0, 0)),     # resident block-diag metric
            pl.BlockSpec((CD, C), lambda i: (0, 0)),      # resident segment-sum (-0.5 folded)
            pl.BlockSpec((1, C), lambda i: (0, 0)),       # resident bias
        ],
        out_specs=pl.BlockSpec((tb, C), lambda i: (i, 0)),
        compiler_params=pltpu.CompilerParams(
            dimension_semantics=("parallel",)),
    )(v_flat, m_block, seg_scaled, bias2d)
    return out[:B]


# --------------------------------------------------------------------------- #
# Pure-JAX reference mirroring the PyTorch forward
# --------------------------------------------------------------------------- #
def reference(node_feats, means, sigma, bias, rows, cols):
    v, metric = _prepare(node_feats, means, sigma, rows, cols)
    q = jnp.einsum("bcd,cde,bce->bc", v, metric, v)
    return -0.5 * q + bias[None, :]


if __name__ == "__main__":
    key = jax.random.PRNGKey(0)
    dims = 4                        # args.hidden_dims
    n_centroids = 8                 # args.n_centroids
    B = 16                          # batch of SPD node features
    D = dims * (dims + 1) // 2      # upper_diag_n = 10

    k1, k2, k3 = jax.random.split(key, 3)

    # SPD inputs: A @ A^T + 0.5 I  (strictly positive definite)
    A = jax.random.normal(k1, (B, dims, dims), jnp.float32)
    node_feats = jnp.einsum("bij,bkj->bik", A, A) + 0.5 * jnp.eye(dims, dtype=jnp.float32)

    # glorot (uniform) initialization, deterministic in-script
    def glorot(k, shape):
        fan_in, fan_out = shape[-2], shape[-1]
        std = (6.0 / (fan_in + fan_out)) ** 0.5
        return jax.random.uniform(k, shape, jnp.float32, -std, std)

    means = glorot(k2, (n_centroids, dims, dims))
    sigma = glorot(k3, (n_centroids, D, D))
    bias = jnp.ones((n_centroids,), jnp.float32)

    rows_np, cols_np = np.triu_indices(dims)  # same ordering as torch.triu_indices
    rows = jnp.asarray(rows_np, jnp.int32)
    cols = jnp.asarray(cols_np, jnp.int32)

    fwd = jax.jit(spd_logistic_classifier)
    out = jax.block_until_ready(fwd(node_feats, means, sigma, bias, rows, cols))

    ref = reference(node_feats, means, sigma, bias, rows, cols)
    np.testing.assert_allclose(np.asarray(out), np.asarray(ref), rtol=1e-4, atol=1e-4)
    print("KERNEL_OK")
</pallas_src>

<mosaic_0001>
module attributes {stable_mosaic.version = 11 : i64} {
  func.func @spd_classifier_kernel(%arg0: i32, %arg1: memref<16x80xf32, #tpu.memory_space<vmem>>, %arg2: memref<80x80xf32, #tpu.memory_space<vmem>>, %arg3: memref<80x8xf32, #tpu.memory_space<vmem>>, %arg4: memref<1x8xf32, #tpu.memory_space<vmem>>, %arg5: memref<16x8xf32, #tpu.memory_space<vmem>>) attributes {dimension_semantics = [#tpu.dimension_semantics<parallel>], iteration_bounds = array<i64: 1>, scalar_prefetch = 0 : i64, scratch_operands = 0 : i64, tpu.core_type = #tpu.core_type<tc>, window_params = [{transform_indices = @transform_0, window_bounds = array<i64: 16, 80>}, {pipeline_mode = #tpu.pipeline_mode<synchronous>, transform_indices = @transform_1, window_bounds = array<i64: 80, 80>}, {pipeline_mode = #tpu.pipeline_mode<synchronous>, transform_indices = @transform_2, window_bounds = array<i64: 80, 8>}, {pipeline_mode = #tpu.pipeline_mode<synchronous>, transform_indices = @transform_3, window_bounds = array<i64: 1, 8>}, {transform_indices = @transform_4, window_bounds = array<i64: 16, 8>}]} {
    %c0 = arith.constant 0 : index
    %c0_0 = arith.constant 0 : index
    %0 = vector.load %arg1[%c0, %c0_0] : memref<16x80xf32, #tpu.memory_space<vmem>>, vector<16x80xf32>
    %c0_1 = arith.constant 0 : index
    %c0_2 = arith.constant 0 : index
    %1 = vector.load %arg2[%c0_1, %c0_2] : memref<80x80xf32, #tpu.memory_space<vmem>>, vector<80x80xf32>
    %cst = arith.constant dense<0.000000e+00> : vector<16x80xf32>
    %2 = tpu.matmul %0, %1, %cst {dimension_numbers = #tpu.dot_dimension_numbers<[1], [0], [0], [1], [0, 0, 1, 1], [], []>} : vector<16x80xf32>, vector<80x80xf32>, vector<16x80xf32> -> vector<16x80xf32>
    %3 = arith.mulf %2, %0 : vector<16x80xf32>
    %c0_3 = arith.constant 0 : index
    %c0_4 = arith.constant 0 : index
    %4 = vector.load %arg3[%c0_3, %c0_4] : memref<80x8xf32, #tpu.memory_space<vmem>>, vector<80x8xf32>
    %cst_5 = arith.constant dense<0.000000e+00> : vector<16x8xf32>
    %5 = tpu.matmul %3, %4, %cst_5 {dimension_numbers = #tpu.dot_dimension_numbers<[1], [0], [0], [1], [0, 0, 1, 1], [], []>} : vector<16x80xf32>, vector<80x8xf32>, vector<16x8xf32> -> vector<16x8xf32>
    %c0_6 = arith.constant 0 : index
    %c0_7 = arith.constant 0 : index
    %6 = vector.load %arg4[%c0_6, %c0_7] : memref<1x8xf32, #tpu.memory_space<vmem>>, vector<1x8xf32>
    %7 = vector.broadcast %6 : vector<1x8xf32> to vector<16x8xf32>
    %8 = arith.addf %5, %7 : vector<16x8xf32>
    %c0_8 = arith.constant 0 : index
    %c0_9 = arith.constant 0 : index
    %9 = vector.load %arg5[%c0_8, %c0_9] : memref<16x8xf32, #tpu.memory_space<vmem>>, vector<16x8xf32>
    tpu.vector_store %arg5[%c0_8, %c0_9], %8 {strides = array<i32>} : memref<16x8xf32, #tpu.memory_space<vmem>>, vector<16x8xf32>,
    return
  }
  func.func @transform_0(%arg0: i32) -> (i32, i32) {
    %c0_i32 = arith.constant 0 : i32
    %c0_i32_0 = arith.constant 0 : i32
    return %arg0, %c0_i32 : i32, i32
  }
  func.func @transform_1(%arg0: i32) -> (i32, i32) {
    %c0_i32 = arith.constant 0 : i32
    %c0_i32_0 = arith.constant 0 : i32
    %c0_i32_1 = arith.constant 0 : i32
    return %c0_i32, %c0_i32_0 : i32, i32
  }
  func.func @transform_2(%arg0: i32) -> (i32, i32) {
    %c0_i32 = arith.constant 0 : i32
    %c0_i32_0 = arith.constant 0 : i32
    %c0_i32_1 = arith.constant 0 : i32
    return %c0_i32, %c0_i32_0 : i32, i32
  }
  func.func @transform_3(%arg0: i32) -> (i32, i32) {
    %c0_i32 = arith.constant 0 : i32
    %c0_i32_0 = arith.constant 0 : i32
    %c0_i32_1 = arith.constant 0 : i32
    return %c0_i32, %c0_i32_0 : i32, i32
  }
  func.func @transform_4(%arg0: i32) -> (i32, i32) {
    %c0_i32 = arith.constant 0 : i32
    %c0_i32_0 = arith.constant 0 : i32
    return %arg0, %c0_i32 : i32, i32
  }
}

</mosaic_0001>

<bundles_post_ra>
// kernel: custom-call.11
= control target key start
LH: loop header
LB: loop body
LE: loop exit
PB: predicated region body
PF: predicated region fallthrough
CT: control target
= control target key end

     0   :  { %s1694_s30 = smov 0   ;;  %s1696_s10 = smov 0   ;;  %s2020_s0 = inlined_call_operand.vmem [shape: f32[8,2,2], index: 0, kind: input, shape index: {}]   ;;  %s2021_s1 = inlined_call_operand.vmem [shape: f32[8,2,2], index: 1, kind: input, shape index: {}]   ;;  %s2022_s2 = inlined_call_operand.vmem [shape: f32[8,2,2], index: 2, kind: input, shape index: {}]   ;;  %s2023_s3 = inlined_call_operand.vmem [shape: f32[8,2,2], index: 3, kind: input, shape index: {}]   ;;  %s2024_s4 = inlined_call_operand.vmem [shape: f32[8,2], index: 4, kind: output, shape index: {0}]   ;;  %s2025_s5 = inlined_call_operand.vmem [shape: f32[8,2], index: 5, kind: output, shape index: {1}]   ;;  %s2026_s6 = inlined_call_operand.vmem [shape: f32[8,2,2], index: 6, kind: output, shape index: {2}]   ;;  %s2027_s7 = inlined_call_operand.vmem [shape: f32[8,2,2], index: 7, kind: output, shape index: {3}]   ;;  %s2028_s8 = inlined_call_operand.vmem [shape: f32[8,2,2], index: 8, kind: output, shape index: {4}]   ;;  %s2029_s9 = inlined_call_operand.vmem [shape: f32[8,2,2], index: 9, kind: output, shape index: {5}]  }
   0x1   :  { %s1698_s11 = smov 0  }
   0x2 LB: > { %s1710_s12 = sadd.s32 4294967295, %s1631_s11   ;;  %s1713_s13 = sadd.s32 1, %s1631_s11   ;;  %s1631_s11 = sphi %s1698_s11, %s2048_s11   ;;  %s1627_s10 = sphi %s1696_s10, %s2047_s10   ;;  %s1623_s30 = sphi %s1694_s30, %s2046_s30  }
   0x3   : > { %s20_s14 = sshrl.u32 %s1631_s11, 3  ;;  %s21_s15 = sshrl.u32 %s1713_s13, 3 }
   0x4   : > { %s22_s16 = ssub.s32 %s20_s14, %s21_s15  ;;  %s25_s17 = sadd.s32 1, %s1627_s10 }
   0x5   : > { %p23_p0 = scmp.eq.s32.totalorder %s22_s16, 0  ;;  %p35_p1 = scmp.ne.s32.totalorder %s1627_s10, %s1623_s30 }
   0x6   : > { %p36_p2 = scmp.eq.s32.totalorder %s1710_s12, 7  ;;  %p1492_p4 = scmp.ge.s32.totalorder %s1631_s11, 8 }
   0x7   : > { %s1722_s18 = scalar_select %p23_p0, %s1627_s10, %s25_s17  }
   0x8   : > { %p1724_p3 = por %p36_p2, %p35_p1  ;;  %86 = sbr.rel (%p1492_p4) target bundleno = 17 (0x11), region = 16 }
   0x9   : > { %2030 = sst [smem:[#allocation31_spill]] %s1722_s18  ;;  %s88_s20 = sand.u32 (!%p1492_p4), 1, %s1631_s11  }
   0xa   : > { %s1494_s21 = sshll.u32 (!%p1492_p4), %s1631_s11, 1  ;;  %s1493_s22 = sshll.u32 (!%p1492_p4), %s88_s20, 1 }
   0xb   : > { %s92_s25 = scalar_lea.vmem (!%p1492_p4), %s2020_s0, %s1494_s21  ;;  %s90_s26 = scalar_lea.vmem (!%p1492_p4), [#allocation1], %s1493_s22 }
   0xc   : > { %v108_v0 = vld [vmem:[%s92_s25] sm:$0x3] (!%p1492_p4)  ;;  %s129_s29 = scalar_lea.vmem (!%p1492_p4), %s2021_s1, %s1494_s21  ;;  %s166_s16 = scalar_lea.vmem (!%p1492_p4), %s2022_s2, %s1494_s21 }
   0xd   : > { %109 = vst [vmem:[%s90_s26] sm:$0x3] (!%p1492_p4), %v108_v0  ;;  %v145_v1 = vld [vmem:[%s129_s29] sm:$0x3] (!%p1492_p4)  ;;  %s127_s17 = scalar_lea.vmem (!%p1492_p4), [#allocation3], %s1493_s22  ;;  %s203_s23 = scalar_lea.vmem (!%p1492_p4), %s2023_s3, %s1494_s21 }
   0xe   : > { %146 = vst [vmem:[%s127_s17] sm:$0x3] (!%p1492_p4), %v145_v1  ;;  %v182_v2 = vld [vmem:[%s166_s16] sm:$0x3] (!%p1492_p4)  ;;  %s164_s24 = scalar_lea.vmem (!%p1492_p4), [#allocation5], %s1493_s22  ;;  %s201_s25 = scalar_lea.vmem (!%p1492_p4), [#allocation7], %s1493_s22 }
   0xf   : > { %183 = vst [vmem:[%s164_s24] sm:$0x3] %v182_v2  ;;  %v219_v3 = vld [vmem:[%s203_s23] sm:$0x3] }
  0x10   : > { %220 = vst [vmem:[%s201_s25] sm:$0x3] %v219_v3 }
  0x11 PF: > { %p1501_p5 = scmp.ge.s32.totalorder %s1631_s11, 1  ;;  %p236_p6 = scmp.lt.s32.totalorder %s1631_s11, 9 }
  0x13   : > { %p237_p7 = pnand %p1501_p5, %p236_p6 }
  0x15   : > { %240 = sbr.rel (%p237_p7) target bundleno = 991 (0x3df), region = 140 }
  0x1c   : > { %s259_s26 = sand.u32 1, %s1710_s12   ;;  %s277_s27 = sand.u32 1, %s1623_s30   ;;  %v337_v4 = vlaneseq  ;;  %v1641_v5 = vmov 0.0  }
  0x1d   : > { %s1747_s28 = sshll.u32 %s259_s26, 1  ;;  %s1749_s18 = sshll.u32 %s277_s27, 3  ;;  %332 = vst [vmem:[#allocation10] sm:$0xff] %v1641_v5  ;;  %333 = vst [vmem:[#allocation12] sm:$0xff] %v1641_v5 }
  0x1e   : > { %334 = vst [vmem:[#allocation14] sm:$0xff] %v1641_v5  ;;  %335 = vst [vmem:[#allocation16] sm:$0xff] %v1641_v5  ;;  %v1751_v6 = vand.u32 127, %v337_v4  ;;  %v1753_v7 = vshrl.u32 %v337_v4, 7  ;;  %s261_s11 = scalar_lea.vmem [#allocation1], %s1747_s28  ;;  %s265_s30 = scalar_lea.vmem [#allocation3], %s1747_s28 }
  0x1f   : > { %v304_v8 = vld [vmem:[%s261_s11] sm:$0x3]  ;;  %v308_v9 = vld [vmem:[%s265_s30] sm:$0x3]  ;;  %s269_s21 = scalar_lea.vmem [#allocation5], %s1747_s28  ;;  %s273_s22 = scalar_lea.vmem [#allocation7], %s1747_s28 }
  0x20   : > { %305 = vst [vmem:[#allocation0] sm:$0x3] %v304_v8  ;;  %309 = vst [vmem:[#allocation2] sm:$0x3] %v308_v9  ;;  %v312_v10 = vld [vmem:[%s269_s21] sm:$0x3]  ;;  %v339_v6 = vmov %v1751_v6  ;;  %v342_v7 = vmov %v1753_v7 }
  0x21   : > { %v316_v11 = vld [vmem:[%s273_s22] sm:$0x3]  ;;  %313 = vst [vmem:[#allocation4] sm:$0x3] %v312_v10  ;;  %v352_v6 = vmov %v1751_v6  ;;  %v355_v7 = vmov %v1753_v7  ;;  %s320_s29 = smov [#allocation18]  ;;  %s323_s14 = smov [#allocation19]  ;;  %vm346_vm0 = vcmp.eq.s32.totalorder %v342_v7, %v339_v6 }
  0x22   : > { %317 = vst [vmem:[#allocation6] sm:$0x3] %v316_v11  ;;  %vm359_vm1 = vcmp.eq.s32.totalorder %v355_v7, %v352_v6  ;;  %s336_s15 = smov [#allocation10]  ;;  %s349_s16 = smov [#allocation16]  ;;  %vm1381_vm2 = vcmp.lt.s32.totalorder %v1751_v6, 2  ;;  %v1373_v6 = vmov %v1751_v6  ;;  %v1376_v7 = vmov %v1753_v7 }
  0x23   : > { %s326_s17 = smov [#allocation20]  ;;  %s329_s20 = smov [#allocation21]  ;;  %vm1386_vm3 = vcmp.eq.s32.totalorder %v1376_v7, %v1373_v6  ;;  %v1424_v6 = vmov %v1751_v6  ;;  %v1393_v7 = vmov %v1753_v7 }
  0x24   : > { %v343_v12 = vld [vmem:[%s336_s15] sm:$0x3]  ;;  %s1377_s30 = smov [#allocation18]  ;;  %s1394_s21 = smov [#allocation19]  ;;  %v1390_v6 = vmov %v1751_v6  ;;  %v1427_v7 = vmov %v1753_v7 }
  0x25   : > { %v356_v13 = vld [vmem:[%s349_s16] sm:$0x3]  ;;  %v347_v16 = vsel %vm346_vm0, 1.0, %v343_v12  ;;  %s1411_s22 = smov [#allocation20]  ;;  %v1407_v6 = vmov %v1751_v6  ;;  %v1410_v7 = vmov %v1753_v7  ;;  %vm1437_vm4 = vcmp.eq.s32.totalorder %v1427_v7, %v1424_v6 }
  0x26   : > { %v360_v17 = vsel %vm359_vm1, 1.0, %v356_v13  ;;  %348 = vst [vmem:[%s336_s15] sm:$0x3] %v347_v16 }
  0x27   : > { %v321_v14 = vld [vmem:[#allocation0] sm:$0xff]  ;;  %v324_v15 = vld [vmem:[#allocation2] sm:$0xff]  ;;  %361 = vst [vmem:[%s349_s16] sm:$0x3] %v360_v17 }
  0x28   : > { %322 = vst [vmem:[%s320_s29] sm:$0xff] %v321_v14  ;;  %325 = vst [vmem:[%s323_s14] sm:$0xff] %v324_v15  ;;  %v327_v18 = vld [vmem:[#allocation4] sm:$0xff]  ;;  %s1428_s29 = smov [#allocation21] }
  0x29   : > { %v330_v19 = vld [vmem:[#allocation6] sm:$0xff]  ;;  %328 = vst [vmem:[%s326_s17] sm:$0xff] %v327_v18 }
  0x2a   : > { %331 = vst [vmem:[%s329_s20] sm:$0xff] %v330_v19 }
  0x2f   : > { %v1383_v20 = vld [vmem:[%s1377_s30] sm:$0x3] }
  0x30   : > { %v1400_v21 = vld [vmem:[%s1394_s21] sm:$0x3]  ;;  %v1384_v22 = vsel %vm1381_vm2, %v1383_v20, 0.0 }
  0x31   : > { %v1401_v23 = vsel %vm1381_vm2, %v1400_v21, 0.0  ;;  %v1417_v24 = vld [vmem:[%s1411_s22] sm:$0x3]  ;;  %v1385_v26 = vmul.f32 %v1384_v22, %v1384_v22 }
  0x32   : > { %v1434_v25 = vld [vmem:[%s1428_s29] sm:$0x3]  ;;  %v1402_v27 = vmul.f32 %v1401_v23, %v1401_v23  ;;  %v1418_v28 = vsel %vm1381_vm2, %v1417_v24, 0.0 }
  0x33   : > { %v1435_v29 = vsel %vm1381_vm2, %v1434_v25, 0.0  ;;  %v1419_v30 = vmul.f32 %v1418_v28, %v1418_v28  ;;  %v1387_v33 = vsel %vm1386_vm3, 0.0, %v1385_v26 }
  0x34   : > { %v1404_v31 = vadd.f32 %v1402_v27, %v1385_v26  ;;  %v1436_v32 = vmul.f32 %v1435_v29, %v1435_v29  ;;  %v1403_v34 = vadd.f32 %v1402_v27, %v1387_v33 }
  0x36   : > { %v1421_v35 = vadd.f32 %v1419_v30, %v1404_v31  ;;  %v1420_v36 = vadd.f32 %v1419_v30, %v1403_v34  ;;  %v1438_v37 = vsel %vm1437_vm4, 0.0, %v1436_v32 }
  0x38   : > { %v1440_v38 = vadd.f32 %v1436_v32, %v1421_v35  ;;  %v1439_v39 = vadd.f32 %v1438_v37, %v1420_v36 }
  0x3a   : > { %1441 = vadd.xlane.f32.xlu0 %v1440_v38 }
  0x3e   : > { %1449 = vadd.xlane.f32.xlu0 %v1439_v39 }
  0xc7   : > { %v1442_v40 = vpop.xlane.xlu0 %1441 }
  0xc8   : > { %v1443_v41 = vrot.slane %v1442_v40, 4 }
  0xca   : > { %v1444_v42 = vadd.f32 %v1443_v41, %v1442_v40 }
  0xcb   : > { %v1450_v43 = vpop.xlane.xlu0 %1449 }
  0xcc   : > { %v1445_v44 = vrot.slane %v1444_v42, 2  ;;  %v1451_v45 = vrot.slane %v1450_v43, 4 }
  0xce   : > { %v1452_v46 = vadd.f32 %v1451_v45, %v1450_v43  ;;  %v1446_v47 = vadd.f32 %v1445_v44, %v1444_v42 }
  0xd0   : > { %v1453_v48 = vrot.slane %v1452_v46, 2  ;;  %v1447_v50 = vrot.slane %v1446_v47, 1 }
  0xd2   : > { %v1454_v49 = vadd.f32 %v1453_v48, %v1452_v46  ;;  %v1448_v53 = vadd.f32 %v1447_v50, %v1446_v47 }
  0xd4   : > { %v1455_v51 = vrot.slane %v1454_v49, 1 }
  0xd6   : > { %v1456_v52 = vadd.f32 %v1455_v51, %v1454_v49 }
  0xd8   : > { %1542 = vpush %v1456_v52 }
  0xd9   : > { %1544 = vpush %v1448_v53 }
 0x109   : > { %s1543_s14 = spop %1542 }
 0x10a   : > { %s1545_s15 = spop %1544 }
 0x10b   : > { %s1459_s16 = smul.f32 1e-10, %s1545_s15 }
 0x10d   : > { %p1460_p8 = scmp.le.f32.partialorder %s1543_s14, %s1459_s16 }
 0x10e   : > { %s1787_s17 = smov (!%p1460_p8), 0  }
 0x10f   : > { %1463 = sbr.rel (%p1460_p8) target bundleno = 953 (0x3b9), region = 475 }
 0x116 LB: >> { %s1792_s20 = smov 0   ;;  %s1635_s17 = sphi %s1787_s17, %s2032_s17  }
 0x117 LB: >>> { %s466_s30 = smov [#allocation18]  ;;  %v470_v6 = vmov %v1751_v6  ;;  %v473_v7 = vmov %v1753_v7  ;;  %s486_s21 = smov [#allocation19]  ;;  %vm789_vm14 = vcmp.eq.s32.totalorder %v1753_v7, 0  ;;  %vm801_vm15 = vcmp.eq.s32.totalorder %v1753_v7, 1  ;;  %s1639_s20 = sphi %s1792_s20, %s465_s20  }
 0x118   : >>> { %v490_v6 = vmov %v1751_v6  ;;  %v493_v7 = vmov %v1753_v7  ;;  %v474_v54 = vld [vmem:[%s466_s30] sm:$0x3]  ;;  %vm477_vm5 = vcmp.eq.s32.totalorder %v473_v7, %v470_v6  ;;  %s506_s22 = smov [#allocation21]  ;;  %s467_s29 = smov [#allocation22] }
 0x119   : >>> { %vm497_vm6 = vcmp.eq.s32.totalorder %v493_v7, %v490_v6  ;;  %v510_v6 = vmov %v1751_v6  ;;  %v513_v7 = vmov %v1753_v7  ;;  %v478_v55 = vsel %vm477_vm5, %v474_v54, 0.0  ;;  %v494_v56 = vld [vmem:[%s486_s21] sm:$0x3]  ;;  %s487_s14 = smov [#allocation23]  ;;  %s507_s15 = smov [#allocation24] }
 0x11a   : >>> { %vm517_vm7 = vcmp.eq.s32.totalorder %v513_v7, %v510_v6  ;;  %v479_v57 = vrot.slane %v478_v55, 4  ;;  %v498_v58 = vsel %vm497_vm6, %v494_v56, 0.0  ;;  %v514_v59 = vld [vmem:[%s506_s22] sm:$0x3]  ;;  %s530_s16 = smov [#allocation23]  ;;  %s528_s30 = smov [#allocation22]  ;;  %v579_v6 = vmov %v1751_v6 }
 0x11b   : >>> { %v499_v60 = vrot.slane %v498_v58, 4  ;;  %v518_v61 = vsel %vm517_vm7, %v514_v59, 0.0  ;;  %s532_s21 = smov [#allocation24]  ;;  %s567_s22 = smov [#allocation25]  ;;  %v582_v7 = vmov %v1753_v7  ;;  %v594_v6 = vmov %v1751_v6 }
 0x11c   : >>> { %v480_v62 = vadd.f32 %v479_v57, %v478_v55  ;;  %v519_v63 = vrot.slane %v518_v61, 4  ;;  %v597_v7 = vmov %v1753_v7  ;;  %vm584_vm12 = vcmp.eq.s32.totalorder %v582_v7, %v579_v6  ;;  %s1811_s24 = smov [#allocation20]  ;;  %s1817_s23 = smov [#allocation12] }
 0x11d   : >>> { %v500_v0 = vadd.f32 %v499_v60, %v498_v58  ;;  %vm599_vm13 = vcmp.eq.s32.totalorder %v597_v7, %v594_v6  ;;  %s829_s11 = smov [#allocation29]  ;;  %s1823_s27 = smov [#allocation16]  ;;  %v615_v55 = vld [vmem:[%s1811_s24] sm:$0x3]  ;;  %v692_v6 = vmov %v1751_v6  ;;  %v695_v7 = vmov %v1753_v7 }
 0x11e   : >>> { %v481_v1 = vrot.slane %v480_v62, 2  ;;  %v520_v2 = vadd.f32 %v519_v63, %v518_v61  ;;  %v838_v58 = vld [vmem:[%s1817_s23] sm:$0x3]  ;;  %s607_s26 = smov [#allocation30]  ;;  %s831_s25 = smov [#allocation30]  ;;  %v706_v6 = vmov %v1751_v6  ;;  %v709_v7 = vmov %v1753_v7 }
 0x11f   : >>> { %v501_v3 = vrot.slane %v500_v0, 2  ;;  %v840_v61 = vld [vmem:[%s1823_s27] sm:$0x3]  ;;  %vm699_vm0 = vcmp.eq.s32.totalorder %v695_v7, %v692_v6  ;;  %v665_v6 = vmov %v1751_v6  ;;  %v668_v7 = vmov %v1753_v7  ;;  %s465_s20 = sadd.s32 1, %s1639_s20  }
 0x120   : >>> { %v482_v4 = vadd.f32 %v481_v1, %v480_v62  ;;  %v521_v5 = vrot.slane %v520_v2, 2  ;;  %v679_v6 = vmov %v1751_v6  ;;  %v682_v7 = vmov %v1753_v7  ;;  %p462_p9 = scmp.ge.s32.totalorder %s465_s20, 3  }
 0x121   : >>> { %v502_v8 = vadd.f32 %v501_v3, %v500_v0  ;;  %vm714_vm1 = vcmp.eq.s32.totalorder %v709_v7, %v706_v6  ;;  %vm673_vm3 = vcmp.eq.s32.totalorder %v668_v7, %v665_v6  ;;  %vm686_vm4 = vcmp.eq.s32.totalorder %v682_v7, %v679_v6 }
 0x122   : >>> { %v483_v9 = vrot.slane %v482_v4, 1  ;;  %v522_v10 = vadd.f32 %v521_v5, %v520_v2  ;;  %vm728_vm5 = vcmp.eq.s32.totalorder %v1751_v6, 0  ;;  %vm732_vm6 = vcmp.eq.s32.totalorder %v1751_v6, 1 }
 0x123   : >>> { %v503_v11 = vrot.slane %v502_v8, 1  ;;  %v366_v6 = vmov (%p462_p9), %v1751_v6  ;;  %v369_v7 = vmov (%p462_p9), %v1753_v7 }
 0x124   : >>> { %v484_v12 = vadd.f32 %v483_v9, %v482_v4  ;;  %v523_v13 = vrot.slane %v522_v10, 1  ;;  %v419_v6 = vmov (%p462_p9), %v1751_v6  ;;  %vm381_vm7 = vcmp.eq.s32.totalorder (%p462_p9), %v369_v7, %v366_v6 }
 0x125   : >>> { %v504_v14 = vadd.f32 %v503_v11, %v502_v8  ;;  %v422_v7 = vmov (%p462_p9), %v1753_v7  ;;  %v385_v6 = vmov (%p462_p9), %v1751_v6 }
 0x126   : >>> { %485 = vst [vmem:[%s467_s29] sm:$0x1] %v484_v12  ;;  %v524_v15 = vadd.f32 %v523_v13, %v522_v10  ;;  %s569_s29 = smov [#allocation26]  ;;  %v388_v7 = vmov (%p462_p9), %v1753_v7  ;;  %v402_v6 = vmov (%p462_p9), %v1751_v6 }
 0x127   : >>> { %505 = vst [vmem:[%s487_s14] sm:$0x1] %v504_v14  ;;  %s526_s14 = smov [#allocation27]  ;;  %v405_v7 = vmov (%p462_p9), %v1753_v7 }
 0x128   : >>> { %525 = vst [vmem:[%s507_s15] sm:$0x1] %v524_v15  ;;  %s527_s15 = smov [#allocation28]  ;;  %s571_s14 = smov %s526_s14 }
 0x129   : >>> { %s573_s15 = smov %s527_s15 }
 0x12d   : >>> { %v529_v18 = vld [vmem:[%s528_s30] sm:$0xff]  ;;  %s590_s30 = smov [#allocation28] }
 0x12e   : >>> { %v531_v16 = vld [vmem:[%s530_s16] sm:$0xff]  ;;  %v552_v31 = vand.u32 2147483647, %v529_v18  ;;  %s575_s16 = smov [#allocation27] }
 0x12f   : >>> { %v535_v17 = vmul.f32 2.0, %v531_v16  ;;  %v533_v19 = vld [vmem:[%s532_s21] sm:$0xff]  ;;  %v553_v36 = vand.u32 2147483647, %v531_v16  ;;  %s588_s21 = smov [#allocation29] }
 0x130   : >>> { %v534_v20 = vsub.f32 %v533_v19, %v529_v18  ;;  %v554_v32 = vand.u32 2147483647, %v533_v19 }
 0x131   : >>> { %1593 = vrcp.f32 %v535_v17 }
 0x132   : >>> { %v555_v35 = vmin.f32 %v552_v31, %v554_v32 }
 0x134   : >>> { %v556_v37 = vmul.f32 1.1920929e-08, %v555_v35 }
 0x136   : >>> { %vm557_vm11 = vcmp.le.f32.partialorder %v553_v36, %v556_v37 }
 0x13b   : >>> { %v1594_v21 = vpop.eup %1593 }
 0x13c   : >>> { %v537_v22 = vmul.f32 %v1594_v21, %v534_v20 }
 0x13e   : >>> { %v539_v23 = vmul.f32 %v537_v22, %v537_v22  ;;  %vm538_vm10 = vcmp.ge.f32.partialorder %v537_v22, 0.0 }
 0x140   : >>> { %v540_v24 = vadd.f32 1.0, %v539_v23 }
 0x142   : >>> { %1595 = vrsqrt.f32 %v540_v24  ;;  %vm543_vm8 = vcmp.eq.f32.partialorder %v540_v24, inf  ;;  %v546_v26 = vand.u32 2147483648, %v540_v24  ;;  %vm545_vm9 = vcmp.eq.f32.partialorder %v540_v24, 0.0 }
 0x14c   : >>> { %v1596_v25 = vpop.eup %1595 }
 0x14d   : >>> { %v542_v27 = vmul.f32 %v1596_v25, %v540_v24 }
 0x14f   : >>> { %v544_v28 = vsel %vm543_vm8, %v540_v24, %v542_v27  ;;  %vm434_vm8 = vcmp.eq.s32.totalorder (%p462_p9), %v422_v7, %v419_v6 }
 0x150   : >>> { %v547_v29 = vsel %vm545_vm9, %v546_v26, %v544_v28 }
 0x151   : >>> { %v548_v30 = vxor.u32 2147483648, %v547_v29 }
 0x153   : >>> { %v549_v33 = vsel %vm538_vm10, %v547_v29, %v548_v30 }
 0x154   : >>> { %v550_v34 = vadd.f32 %v549_v33, %v537_v22 }
 0x156   : >>> { %1597 = vrcp.f32 %v550_v34 }
 0x160   : >>> { %v1598_v38 = vpop.eup %1597 }
 0x161   : >>> { %v558_v39 = vsel %vm557_vm11, 0.0, %v1598_v38 }
 0x162   : >>> { %v559_v40 = vmul.f32 %v558_v39, %v558_v39  ;;  %v563_v41 = vmul.f32 %v558_v39, %v531_v16 }
 0x164   : >>> { %v560_v42 = vadd.f32 1.0, %v559_v40  ;;  %v564_v43 = vsub.f32 %v529_v18, %v563_v41  ;;  %v566_v44 = vadd.f32 %v563_v41, %v533_v19 }
 0x166   : >>> { %1599 = vrsqrt.f32 %v560_v42  ;;  %568 = vst [vmem:[%s567_s22] sm:$0xff] %v564_v43  ;;  %570 = vst [vmem:[%s569_s29] sm:$0xff] %v566_v44  ;;  %s605_s22 = smov [#allocation29]  ;;  %s1807_s29 = smov [#allocation18] }
 0x167   : >>> { %v613_v53 = vld [vmem:[%s1807_s29] sm:$0x3] }
 0x170   : >>> { %v1600_v45 = vpop.eup %1599 }
 0x171   : >>> { %572 = vst [vmem:[%s571_s14] sm:$0xff] %v1600_v45  ;;  %v562_v46 = vmul.f32 %v1600_v45, %v558_v39  ;;  %s603_s14 = smov [#allocation30] }
 0x173   : >>> { %574 = vst [vmem:[%s573_s15] sm:$0xff] %v562_v46  ;;  %s1809_s15 = smov [#allocation19] }
 0x174   : >>> { %v614_v54 = vld [vmem:[%s1809_s15] sm:$0x3] }
 0x178   : >>> { %v576_v47 = vld [vmem:[%s575_s16] ss:$0 sm:$0xff]  ;;  %s1813_s16 = smov [#allocation21] }
 0x179   : >>> { %v585_v48 = vsel %vm584_vm12, %v576_v47, 0.0  ;;  %v616_v56 = vld [vmem:[%s1813_s16] sm:$0x3] }
 0x17a   : >>> { %586 = vadd.xlane.f32.xlu0 %v585_v48  ;;  %v591_v49 = vld [vmem:[%s590_s30] ss:$0 sm:$0xff]  ;;  %s1815_s30 = smov [#allocation10] }
 0x17b   : >>> { %v600_v50 = vsel %vm599_vm13, %v591_v49, 0.0  ;;  %v837_v57 = vld [vmem:[%s1815_s30] sm:$0x3] }
 0x17e   : >>> { %601 = vadd.xlane.f32.xlu0 %v600_v50 }
 0x207   : >>> { %v587_v51 = vpop.xlane.xlu0 %586 }
 0x208   : >>> { %589 = vst [vmem:[%s588_s21] sm:$0xff] %v587_v51  ;;  %s1819_s21 = smov [#allocation14] }
 0x209   : >>> { %v839_v59 = vld [vmem:[%s1819_s21] sm:$0x3] }
 0x20b   : >>> { %v602_v52 = vpop.xlane.xlu0 %601 }
 0x20c   : >>> { %604 = vst [vmem:[%s603_s14] sm:$0xff] %v602_v52  ;;  %s1843_s14 = smov [#allocation21] }
 0x20f   : >>> { %v606_v60 = vld [vmem:[%s605_s22] sm:$0xff]  ;;  %s1841_s22 = smov [#allocation20] }
 0x210   : >>> { %v830_v62 = vld [vmem:[%s829_s11] sm:$0xff]  ;;  %v617_v63 = vmul.f32 %v613_v53, %v606_v60  ;;  %v620_v0 = vmul.f32 %v614_v54, %v606_v60  ;;  %v624_v1 = vmul.f32 %v615_v55, %v606_v60  ;;  %v627_v2 = vmul.f32 %v616_v56, %v606_v60  ;;  %s1839_s11 = smov [#allocation10] }
 0x211   : >>> { %v841_v3 = vmul.f32 %v837_v57, %v830_v62  ;;  %v844_v4 = vmul.f32 %v838_v58, %v830_v62  ;;  %v848_v5 = vmul.f32 %v839_v59, %v830_v62  ;;  %v851_v8 = vmul.f32 %v840_v61, %v830_v62 }
 0x213   : >>> { %v608_v9 = vld [vmem:[%s607_s26] sm:$0xff]  ;;  %s635_s26 = smov [#allocation28] }
 0x214   : >>> { %v832_v10 = vld [vmem:[%s831_s25] sm:$0xff]  ;;  %v618_v11 = vmul.f32 %v615_v55, %v608_v9  ;;  %v621_v12 = vmul.f32 %v616_v56, %v608_v9  ;;  %v623_v13 = vmul.f32 %v613_v53, %v608_v9  ;;  %v626_v14 = vmul.f32 %v614_v54, %v608_v9  ;;  %s633_s25 = smov [#allocation27] }
 0x215   : >>> { %v842_v15 = vmul.f32 %v839_v59, %v832_v10  ;;  %v845_v16 = vmul.f32 %v840_v61, %v832_v10  ;;  %v847_v17 = vmul.f32 %v837_v57, %v832_v10  ;;  %v850_v18 = vmul.f32 %v838_v58, %v832_v10  ;;  %v634_v27 = vld [vmem:[%s633_s25] ss:$0 sm:$0xff]  ;;  %s662_s25 = smov [#allocation25] }
 0x216   : >>> { %v619_v19 = vsub.f32 %v617_v63, %v618_v11  ;;  %v622_v20 = vsub.f32 %v620_v0, %v621_v12  ;;  %v625_v21 = vadd.f32 %v624_v1, %v623_v13  ;;  %v628_v22 = vadd.f32 %v627_v2, %v626_v14  ;;  %v636_v28 = vld [vmem:[%s635_s26] ss:$0 sm:$0xff]  ;;  %s661_s26 = smov [#allocation18] }
 0x217   : >>> { %v843_v23 = vsub.f32 %v841_v3, %v842_v15  ;;  %v846_v24 = vsub.f32 %v844_v4, %v845_v16  ;;  %v849_v25 = vadd.f32 %v848_v5, %v847_v17  ;;  %v852_v26 = vadd.f32 %v851_v8, %v850_v18  ;;  %v669_v63 = vld [vmem:[%s662_s25] ss:$0 sm:$0xff]  ;;  %s905_s25 = sadd.s32 (%p462_p9), 1, %s1635_s17  }
 0x218   : >>> { %630 = vst [vmem:[%s1809_s15] sm:$0x3] %v622_v20  ;;  %632 = vst [vmem:[%s1813_s16] sm:$0x3] %v628_v22  ;;  %s1845_s15 = smov [#allocation18]  ;;  %s703_s16 = smov [#allocation26] }
 0x219   : >>> { %629 = vst [vmem:[%s1807_s29] sm:$0x3] %v619_v19  ;;  %631 = vst [vmem:[%s1811_s24] sm:$0x3] %v625_v21  ;;  %s1847_s24 = smov [#allocation14]  ;;  %s1855_s29 = smov [#allocation19]  ;;  %v710_v59 = vld [vmem:[%s703_s16] ss:$0 sm:$0xff] }
 0x21a   : >>> { %853 = vst [vmem:[%s1815_s30] sm:$0x3] %v843_v23  ;;  %854 = vst [vmem:[%s1817_s23] sm:$0x3] %v846_v24  ;;  %s1849_s23 = smov [#allocation12]  ;;  %s689_s30 = smov [#allocation20] }
 0x21b   : >>> { %855 = vst [vmem:[%s1819_s21] sm:$0x3] %v849_v25  ;;  %856 = vst [vmem:[%s1823_s27] sm:$0x3] %v852_v26  ;;  %s1853_s27 = smov [#allocation16]  ;;  %s702_s21 = smov [#allocation21] }
 0x21c   : >>> { %s805_s16 = smov [#allocation19]  ;;  %p458_p10 = scmp.ge.s32.totalorder (%p462_p9), %s905_s25, 15 }
 0x21d   : >> { %s2032_s17 = smov (%p462_p9), %s905_s25 }
 0x21f   : >>> { %v644_v30 = vld [vmem:[%s1843_s14] sm:$0x3] }
 0x220   : >>> { %v643_v29 = vld [vmem:[%s1841_s22] sm:$0x3]  ;;  %v652_v36 = vmul.f32 %v644_v30, %v636_v28  ;;  %v655_v42 = vmul.f32 %v644_v30, %v634_v27 }
 0x221   : >>> { %v641_v31 = vld [vmem:[%s1845_s15] sm:$0x3]  ;;  %v651_v35 = vmul.f32 %v643_v29, %v634_v27  ;;  %v654_v37 = vmul.f32 %v643_v29, %v636_v28 }
 0x222   : >>> { %v859_v32 = vld [vmem:[%s1839_s11] ss:$0 sm:$0xff]  ;;  %v1521_v34 = vld [vmem:[%s1839_s11 + $0x1] ss:$0 sm:$0xff]  ;;  %v645_v48 = vmul.f32 %v641_v31, %v634_v27  ;;  %v648_v49 = vmul.f32 %v641_v31, %v636_v28 }
 0x223   : >>> { %v1520_v33 = vld [vmem:[%s1839_s11 - $0x1] sm:$0x2]  ;;  %v1523_v40 = vld [vmem:[%s1847_s24 + $0x1] sm:$0x1]  ;;  %v653_v47 = vsub.f32 %v651_v35, %v652_v36  ;;  %v656_v53 = vadd.f32 %v655_v42, %v654_v37 }
 0x224   : >>> { %v866_v38 = vsel %vm789_vm14, %v859_v32, %v1520_v33  ;;  %v870_v39 = vld [vmem:[%s1847_s24] ss:$0 sm:$0xff]  ;;  %v878_v43 = vsel %vm801_vm15, %v1521_v34, %v1523_v40  ;;  %v1525_v45 = vld [vmem:[%s1849_s23 + $0x1] ss:$0 sm:$0xff] }
 0x225   : >>> { %v883_v41 = vld [vmem:[%s1849_s23] ss:$0 sm:$0xff]  ;;  %869 = vst [vmem:[%s1839_s11] sm:$0x3] %v866_v38  ;;  %880 = vst [vmem:[%s1847_s24] sm:$0x3] %v878_v43  ;;  %v1527_v51 = vld [vmem:[%s1853_s27 + $0x1] sm:$0x1] }
 0x226   : >>> { %v1524_v44 = vld [vmem:[%s1849_s23 - $0x1] sm:$0x2]  ;;  %1522 = vst [vmem:[%s1839_s11 + $0x1] sm:$0x1] %v870_v39  ;;  %v902_v54 = vsel %vm801_vm15, %v1525_v45, %v1527_v51  ;;  %659 = vst [vmem:[%s1841_s22] sm:$0x3] %v653_v47  ;;  %s676_s11 = smov [#allocation19] }
 0x227   : >>> { %v894_v46 = vld [vmem:[%s1853_s27] ss:$0 sm:$0xff]  ;;  %v890_v50 = vsel %vm789_vm14, %v883_v41, %v1524_v44  ;;  %660 = vst [vmem:[%s1843_s14] sm:$0x3] %v656_v53  ;;  %s1897_s22 = smov [#allocation20]  ;;  %s1642_s14 = smov 1  }
 0x228   : >>> { %v642_v52 = vld [vmem:[%s1855_s29] sm:$0x3]  ;;  %893 = vst [vmem:[%s1849_s23] sm:$0x3] %v890_v50  ;;  %904 = vst [vmem:[%s1853_s27] sm:$0x3] %v902_v54  ;;  %s718_s24 = smov [#allocation19]  ;;  %s1900_s27 = smov [#allocation21] }
 0x229   : >>> { %v646_v55 = vmul.f32 %v642_v52, %v636_v28  ;;  %v649_v56 = vmul.f32 %v642_v52, %v634_v27  ;;  %1526 = vst [vmem:[%s1849_s23 + $0x1] sm:$0x1] %v894_v46  ;;  %s1643_s23 = smov 127  }
 0x22b   : >>> { %v647_v57 = vsub.f32 %v645_v48, %v646_v55  ;;  %v650_v58 = vadd.f32 %v649_v56, %v648_v49 }
 0x22d   : >>> { %657 = vst [vmem:[%s1845_s15] sm:$0x3] %v647_v57  ;;  %658 = vst [vmem:[%s1855_s29] sm:$0x3] %v650_v58  ;;  %v696_v60 = vld [vmem:[%s689_s30] sm:$0x3]  ;;  %s717_s15 = smov [#allocation18]  ;;  %s781_s29 = smov [#allocation18] }
 0x22e   : >>> { %v700_v61 = vsel %vm699_vm0, 0.0, %v696_v60  ;;  %v711_v62 = vld [vmem:[%s702_s21] sm:$0x3] }
 0x22f   : >>> { %701 = vst [vmem:[%s689_s30] sm:$0x3] %v700_v61  ;;  %v715_v0 = vsel %vm714_vm1, %v710_v59, %v711_v62  ;;  %s782_s30 = smov [#allocation20] }
 0x230   : >>> { %716 = vst [vmem:[%s702_s21] sm:$0x3] %v715_v0  ;;  %s806_s21 = smov [#allocation21] }
 0x234   : >>> { %v670_v1 = vld [vmem:[%s661_s26] sm:$0x3] }
 0x235   : >>> { %v683_v2 = vld [vmem:[%s676_s11] sm:$0x3]  ;;  %v674_v3 = vsel %vm673_vm3, %v669_v63, %v670_v1 }
 0x236   : >>> { %v687_v4 = vsel %vm686_vm4, 0.0, %v683_v2  ;;  %675 = vst [vmem:[%s661_s26] sm:$0x3] %v674_v3  ;;  %v755_v5 = vld [vmem:[%s1897_s22] sm:$0x3]  ;;  %s370_s26 = smov (%p462_p9), [#allocation18] }
 0x237   : >>> { %688 = vst [vmem:[%s676_s11] sm:$0x3] %v687_v4  ;;  %756 = vrot.lane.b32.xlu0 %v755_v5, %s1642_s14  ;;  %v751_v11 = vld [vmem:[%s1900_s27] sm:$0x3]  ;;  %s389_s11 = smov (%p462_p9), [#allocation19] }
 0x238   : >>> { %v772_v12 = vld [vmem:[%s1900_s27] sm:$0x3] }
 0x239   : >>> { %v754_v30 = vld [vmem:[%s1897_s22] sm:$0x3] }
 0x23d   : >>> { %v723_v8 = vld [vmem:[%s717_s15] sm:$0x3] }
 0x23e   : >>> { %724 = vrot.lane.b32.xlu1 %v723_v8, %s1642_s14  ;;  %v719_v9 = vld [vmem:[%s718_s24] sm:$0x3] }
 0x23f   : >>> { %v740_v10 = vld [vmem:[%s718_s24] sm:$0x3] }
 0x240   : >>> { %v722_v18 = vld [vmem:[%s717_s15] sm:$0x3] }
 0x242   : >>> { %720 = vrot.lane.b32.xlu1 %v719_v9, %s1642_s14 }
 0x246   : >>> { %741 = vrot.lane.b32.xlu1 %v740_v10, %s1643_s23 }
 0x24a   : >>> { %752 = vrot.lane.b32.xlu1 %v751_v11, %s1642_s14  ;;  %s423_s14 = smov (%p462_p9), [#allocation21] }
 0x24e   : >>> { %773 = vrot.lane.b32.xlu1 %v772_v12, %s1643_s23 }
 0x2a9   : >>> { %v757_v20 = vpop.permute.xlu0 %756 }
 0x2aa   : >>> { %v761_v22 = vsel %vm728_vm5, %v755_v5, %v757_v20 }
 0x2b0   : >>> { %v725_v13 = vpop.permute.xlu1 %724 }
 0x2b1   : >>> { %v729_v14 = vsel %vm728_vm5, %v723_v8, %v725_v13 }
 0x2b4   : >>> { %v721_v15 = vpop.permute.xlu1 %720 }
 0x2b5   : >>> { %v733_v16 = vsel %vm732_vm6, %v721_v15, %v729_v14 }
 0x2b6   : >>> { %v739_v17 = vsel %vm1381_vm2, %v733_v16, 0.0 }
 0x2b7   : >>> { %747 = vst [vmem:[%s717_s15] sm:$0x3] %v739_v17 }
 0x2b8   : >>> { %v742_v19 = vpop.permute.xlu1 %741 }
 0x2b9   : >>> { %v746_v21 = vsel %vm732_vm6, %v722_v18, %v742_v19 }
 0x2ba   : >>> { %748 = vst [vmem:[%s718_s24] sm:$0x3] %v746_v21 }
 0x2bc   : >>> { %v753_v23 = vpop.permute.xlu1 %752 }
 0x2bd   : >>> { %v765_v24 = vsel %vm732_vm6, %v753_v23, %v761_v22 }
 0x2be   : >>> { %v783_v25 = vld [vmem:[%s781_s29] ss:$0 sm:$0xff]  ;;  %v1513_v27 = vld [vmem:[%s781_s29 + $0x1] ss:$0 sm:$0xff]  ;;  %v771_v29 = vsel %vm1381_vm2, %v765_v24, 0.0 }
 0x2bf   : >>> { %v1512_v26 = vld [vmem:[%s781_s29 - $0x1] sm:$0x2]  ;;  %779 = vst [vmem:[%s1897_s22] sm:$0x3] %v771_v29  ;;  %s406_s22 = smov (%p462_p9), [#allocation20] }
 0x2c0   : >>> { %v790_v28 = vsel %vm789_vm14, %v783_v25, %v1512_v26  ;;  %v774_v31 = vpop.permute.xlu1 %773 }
 0x2c1   : >>> { %793 = vst [vmem:[%s781_s29] sm:$0x3] %v790_v28  ;;  %v807_v32 = vld [vmem:[%s805_s16] ss:$0 sm:$0xff]  ;;  %v1517_v34 = vld [vmem:[%s805_s16 + $0x1] ss:$0 sm:$0xff]  ;;  %v778_v35 = vsel %vm732_vm6, %v754_v30, %v774_v31 }
 0x2c2   : >>> { %v1516_v33 = vld [vmem:[%s805_s16 - $0x1] sm:$0x2]  ;;  %780 = vst [vmem:[%s1900_s27] sm:$0x3] %v778_v35 }
 0x2c3   : >>> { %v814_v36 = vsel %vm789_vm14, %v807_v32, %v1516_v33 }
 0x2c4   : >>> { %817 = vst [vmem:[%s805_s16] sm:$0x3] %v814_v36 }
 0x2c6   : >>> { %v794_v37 = vld [vmem:[%s782_s30] ss:$0 sm:$0xff]  ;;  %v1515_v38 = vld [vmem:[%s782_s30 + $0x1] sm:$0x1] }
 0x2c7   : >>> { %1514 = vst [vmem:[%s781_s29 + $0x1] sm:$0x1] %v794_v37  ;;  %v802_v39 = vsel %vm801_vm15, %v1513_v27, %v1515_v38  ;;  %464 = sbr.rel (!%p462_p9) target bundleno = 279 (0x117), region = 470 }
 0x2c8   : >>> { %804 = vst [vmem:[%s782_s30] sm:$0x3] %v802_v39 }
 0x2c9   : >>> { %v818_v40 = vld [vmem:[%s806_s21] ss:$0 sm:$0xff]  ;;  %v1519_v41 = vld [vmem:[%s806_s21 + $0x1] sm:$0x1] }
 0x2ca   : >>> { %1518 = vst [vmem:[%s805_s16 + $0x1] sm:$0x1] %v818_v40  ;;  %v826_v42 = vsel %vm801_vm15, %v1517_v34, %v1519_v41 }
 0x2cb   : >>> { %828 = vst [vmem:[%s806_s21] sm:$0x3] %v826_v42 }
 0x2ce   : >> { %v376_v43 = vld [vmem:[%s370_s26] sm:$0x3] }
 0x2cf   : >> { %v377_v45 = vsel %vm1381_vm2, %v376_v43, 0.0  ;;  %v412_v47 = vld [vmem:[%s406_s22] sm:$0x3] }
 0x2d0   : >> { %v378_v49 = vmul.f32 %v377_v45, %v377_v45  ;;  %v413_v51 = vsel %vm1381_vm2, %v412_v47, 0.0 }
 0x2d1   : >> { %v395_v44 = vld [vmem:[%s389_s11] sm:$0x3]  ;;  %v414_v53 = vmul.f32 %v413_v51, %v413_v51 }
 0x2d2   : >> { %v396_v46 = vsel %vm1381_vm2, %v395_v44, 0.0  ;;  %v429_v48 = vld [vmem:[%s423_s14] sm:$0x3]  ;;  %v382_v56 = vsel %vm381_vm7, 0.0, %v378_v49 }
 0x2d3   : >> { %v397_v50 = vmul.f32 %v396_v46, %v396_v46  ;;  %v430_v52 = vsel %vm1381_vm2, %v429_v48, 0.0 }
 0x2d4   : >> { %v431_v55 = vmul.f32 %v430_v52, %v430_v52 }
 0x2d5   : >> { %v399_v54 = vadd.f32 %v397_v50, %v378_v49  ;;  %v398_v57 = vadd.f32 %v397_v50, %v382_v56 }
 0x2d6   : >> { %v435_v60 = vsel %vm434_vm8, 0.0, %v431_v55 }
 0x2d7   : >> { %v416_v58 = vadd.f32 %v414_v53, %v399_v54  ;;  %v415_v59 = vadd.f32 %v414_v53, %v398_v57 }
 0x2d9   : >> { %v437_v61 = vadd.f32 %v431_v55, %v416_v58  ;;  %v436_v62 = vadd.f32 %v435_v60, %v415_v59 }
 0x2db   : >> { %438 = vadd.xlane.f32.xlu0 %v437_v61 }
 0x2df   : >> { %446 = vadd.xlane.f32.xlu0 %v436_v62 }
 0x368   : >> { %v439_v63 = vpop.xlane.xlu0 %438 }
 0x369   : >> { %v440_v0 = vrot.slane %v439_v63, 4 }
 0x36b   : >> { %v441_v1 = vadd.f32 %v440_v0, %v439_v63 }
 0x36c   : >> { %v447_v2 = vpop.xlane.xlu0 %446 }
 0x36d   : >> { %v442_v3 = vrot.slane %v441_v1, 2  ;;  %v448_v4 = vrot.slane %v447_v2, 4 }
 0x36f   : >> { %v449_v5 = vadd.f32 %v448_v4, %v447_v2  ;;  %v443_v8 = vadd.f32 %v442_v3, %v441_v1 }
 0x371   : >> { %v450_v9 = vrot.slane %v449_v5, 2  ;;  %v444_v11 = vrot.slane %v443_v8, 1 }
 0x373   : >> { %v451_v10 = vadd.f32 %v450_v9, %v449_v5  ;;  %v445_v14 = vadd.f32 %v444_v11, %v443_v8 }
 0x375   : >> { %v452_v12 = vrot.slane %v451_v10, 1 }
 0x377   : >> { %v453_v13 = vadd.f32 %v452_v12, %v451_v10 }
 0x379   : >> { %1546 = vpush %v453_v13 }
 0x37a   : >> { %1548 = vpush %v445_v14 }
 0x3aa   : >> { %s1547_s20 = spop %1546 }
 0x3ab   : >> { %s1549_s15 = spop %1548 }
 0x3ac   : >> { %s456_s24 = smul.f32 1e-10, %s1549_s15 }
 0x3ae   : >> { %p457_p11 = scmp.le.f32.partialorder %s1547_s20, %s456_s24 }
 0x3b0   : >> { %p459_p12 = por %p458_p10, %p457_p11 }
 0x3b2   : > { %907 = sbr.rel (!%p459_p12) target bundleno = 278 (0x116), region = 481 }
 0x3b9 PF: > { %s912_s23 = smov [#allocation18]  ;;  %v916_v6 = vmov %v1751_v6  ;;  %v919_v7 = vmov %v1753_v7  ;;  %v955_v15 = vld [vmem:[#allocation10] sm:$0x3]  ;;  %v961_v16 = vld [vmem:[#allocation12] sm:$0x3]  ;;  %s2033_s17 = scalar_lea.vmem [#allocation11], %s1747_s28 }
 0x3ba   : > { %v936_v6 = vmov %v1751_v6  ;;  %v939_v7 = vmov %v1753_v7  ;;  %v920_v17 = vld [vmem:[%s912_s23] sm:$0x3]  ;;  %vm923_vm9 = vcmp.eq.s32.totalorder %v919_v7, %v916_v6  ;;  %957 = vst [vmem:[%s2033_s17] sm:$0x3] %v955_v15  ;;  %s2034_s27 = scalar_lea.vmem [#allocation13], %s1747_s28  ;;  %v967_v18 = vld [vmem:[#allocation14] sm:$0x3] }
 0x3bb   : > { %vm943_vm10 = vcmp.eq.s32.totalorder %v939_v7, %v936_v6  ;;  %963 = vst [vmem:[%s2034_s27] sm:$0x3] %v961_v16  ;;  %v973_v19 = vld [vmem:[#allocation16] sm:$0x3]  ;;  %v924_v20 = vsel %vm923_vm9, %v920_v17, 0.0  ;;  %s932_s29 = smov [#allocation21]  ;;  %s2035_s16 = scalar_lea.vmem [#allocation15], %s1747_s28 }
 0x3bc   : > { %969 = vst [vmem:[%s2035_s16] sm:$0x3] %v967_v18  ;;  %s2036_s30 = scalar_lea.vmem [#allocation17], %s1747_s28  ;;  %v925_v21 = vrot.slane %v924_v20, 4  ;;  %v940_v22 = vld [vmem:[%s932_s29] sm:$0x3]  ;;  %s908_s21 = sand.u32 7, %s1710_s12  }
 0x3bd   : > { %975 = vst [vmem:[%s2036_s30] sm:$0x3] %v973_v19  ;;  %v944_v23 = vsel %vm943_vm10, %v940_v22, 0.0  ;;  %s2037_s25 = scalar_lea.vmem [#allocation8], %s1749_s18  ;;  %s2038_s11 = scalar_lea.vmem [#allocation9], %s1749_s18 }
 0x3be   : > { %v926_v24 = vadd.f32 %v925_v21, %v924_v20  ;;  %v945_v25 = vrot.slane %v944_v23, 4  ;;  %s909_s26 = scalar_lea.vmem %s2037_s25, %s908_s21 [#allocation8]  ;;  %s911_s22 = scalar_lea.vmem %s2038_s11, %s908_s21 [#allocation9] }
 0x3bf   : > { %s913_s26 = smov %s909_s26  ;;  %s933_s22 = smov %s911_s22 }
 0x3c0   : > { %v927_v6 = vrot.slane %v926_v24, 2  ;;  %v946_v7 = vadd.f32 %v945_v25, %v944_v23  ;;  %s1003_s14 = sshrl.u32 (%p1724_p3), %s1710_s12, 3  ;;  %s2039_s20 = scalar_lea.vmem (%p1724_p3), [#allocation8], %s1749_s18 }
 0x3c1   : > { %s1534_s15 = sshll.u32 (%p1724_p3), %s1003_s14, 3 }
 0x3c2   : > { %v928_v26 = vadd.f32 %v927_v6, %v926_v24  ;;  %v947_v27 = vrot.slane %v946_v7, 2  ;;  %s1005_s17 = scalar_lea.vmem (%p1724_p3), %s2024_s4, %s1534_s15 }
 0x3c4   : > { %v929_v28 = vrot.slane %v928_v26, 1  ;;  %v948_v29 = vadd.f32 %v947_v27, %v946_v7  ;;  %1002 = sbr.rel (!%p1724_p3) target bundleno = 977 (0x3d1), region = 158 }
 0x3c6   : > { %v930_v30 = vadd.f32 %v929_v28, %v928_v26  ;;  %v949_v31 = vrot.slane %v948_v29, 1 }
 0x3c8   : > { %931 = vst [vmem:[%s913_s26] sm:$0x1] %v930_v30  ;;  %v950_v32 = vadd.f32 %v949_v31, %v948_v29 }
 0x3ca   : > { %951 = vst [vmem:[%s933_s22] sm:$0x1] %v950_v32 }
 0x3cf   : > { %v1033_v33 = vld [vmem:[%s2039_s20] sm:$0xff] }
 0x3d0   : > { %1034 = vst [vmem:[%s1005_s17] sm:$0xff] %v1033_v33 }
 0x3d1 PF: > { %1040 = sbr.rel (!%p1724_p3) target bundleno = 985 (0x3d9), region = 196  ;;  %s1041_s27 = sshrl.u32 (%p1724_p3), %s1710_s12, 3 }
 0x3d2   : > { %s2040_s29 = scalar_lea.vmem (%p1724_p3), [#allocation9], %s1749_s18  ;;  %s1535_s16 = sshll.u32 (%p1724_p3), %s1041_s27, 3 }
 0x3d3   : > { %s1043_s25 = scalar_lea.vmem (%p1724_p3), %s2025_s5, %s1535_s16 }
 0x3d7   : > { %v1071_v34 = vld [vmem:[%s2040_s29] sm:$0xff] (%p1724_p3) }
 0x3d8   : > { %1072 = vst [vmem:[%s1043_s25] sm:$0xff] %v1071_v34 }
 0x3d9 PF: > { %s1536_s26 = sshll.u32 %s1710_s12, 1  ;;  %s2041_s19 = scalar_lea.vmem [#allocation11], %s1747_s28 }
 0x3da   : > { %v1093_v35 = vld [vmem:[%s2041_s19] sm:$0x3]  ;;  %s2042_s11 = scalar_lea.vmem [#allocation13], %s1747_s28  ;;  %s1077_s14 = scalar_lea.vmem %s2026_s6, %s1536_s26 }
 0x3db   : > { %v1126_v36 = vld [vmem:[%s2042_s11] sm:$0x3]  ;;  %s1110_s24 = scalar_lea.vmem %s2027_s7, %s1536_s26  ;;  %s2043_s23 = scalar_lea.vmem [#allocation15], %s1747_s28  ;;  %1094 = vst [vmem:[%s1077_s14] sm:$0x3] %v1093_v35 }
 0x3dc   : > { %v1159_v37 = vld [vmem:[%s2043_s23] sm:$0x3]  ;;  %s2044_s17 = scalar_lea.vmem [#allocation17], %s1747_s28  ;;  %1127 = vst [vmem:[%s1110_s24] sm:$0x3] %v1126_v36  ;;  %s1143_s29 = scalar_lea.vmem %s2028_s8, %s1536_s26 }
 0x3dd   : > { %v1192_v38 = vld [vmem:[%s2044_s17] sm:$0x3]  ;;  %s1176_s21 = scalar_lea.vmem %s2029_s9, %s1536_s26  ;;  %1160 = vst [vmem:[%s1143_s29] sm:$0x3] %v1159_v37 }
 0x3de   : > { %1193 = vst [vmem:[%s1176_s21] sm:$0x3] %v1192_v38 }
 0x3df PF: > { %s2045_s25 = sld [smem:[#allocation31_spill]]  ;;  %p13_p13 = scmp.ge.s32.totalorder %s1713_s13, 10  }
 0x3e0   : > { %s2046_s30 = smov %s1627_s10  ;;  %s2048_s11 = smov %s1713_s13 }
 0x3e1   :  { %15 = sbr.rel (!%p13_p13) target bundleno = 2 (0x2), region = 492 }
 0x3e5   : > { %s2047_s10 = smov %s2045_s25 }

// kernel: custom-call.6
= control target key start
LH: loop header
LB: loop body
LE: loop exit
PB: predicated region body
PF: predicated region fallthrough
CT: control target
= control target key end

     0   :  { %s2197_s0 = inlined_call_operand.vmem [shape: f32[16,8,2,2], index: 0, kind: input, shape index: {}]   ;;  %s2198_s1 = inlined_call_operand.vmem [shape: f32[16,8,2,2], index: 1, kind: input, shape index: {}]   ;;  %s2199_s2 = inlined_call_operand.vmem [shape: f32[16,8,2,2], index: 2, kind: input, shape index: {}]   ;;  %s2200_s3 = inlined_call_operand.vmem [shape: f32[16,8,2,2], index: 3, kind: input, shape index: {}]   ;;  %s2201_s4 = inlined_call_operand.vmem [shape: f32[16,8,2], index: 4, kind: output, shape index: {0}]   ;;  %s2202_s5 = inlined_call_operand.vmem [shape: f32[16,8,2], index: 5, kind: output, shape index: {1}]   ;;  %s2203_s6 = inlined_call_operand.vmem [shape: f32[16,8,2,2], index: 6, kind: output, shape index: {2}]   ;;  %s2204_s7 = inlined_call_operand.vmem [shape: f32[16,8,2,2], index: 7, kind: output, shape index: {3}]   ;;  %s2205_s8 = inlined_call_operand.vmem [shape: f32[16,8,2,2], index: 8, kind: output, shape index: {4}]   ;;  %s2206_s9 = inlined_call_operand.vmem [shape: f32[16,8,2,2], index: 9, kind: output, shape index: {5}]  }
   0x1   :  { %2212 = sst [smem:[#allocation36_spill]] %s2206_s9 }
   0x2   :  { %s1830_s30 = smov 0   ;;  %s1832_s10 = smov 0  }
   0x3   :  { %s1834_s11 = smov 0   ;;  %s1836_s12 = smov 0  }
   0x4   :  { %s1838_s13 = smov 0   ;;  %s1840_s14 = smov 0  }
   0x5   :  { %s1842_s15 = smov 0  }
   0x6 LB: > { %2213 = sst [smem:[#allocation31_spill]] %s1747_s10  ;;  %s25_s16 = sadd.s32 1, %s1759_s13  ;;  %s1767_s15 = sphi %s1842_s15, %s16_s15   ;;  %s1763_s14 = sphi %s1840_s14, %s2238_s14   ;;  %s1759_s13 = sphi %s1838_s13, %s2240_s13   ;;  %s1755_s12 = sphi %s1836_s12, %s2236_s12   ;;  %s1751_s11 = sphi %s1834_s11, %s2239_s11   ;;  %s1747_s10 = sphi %s1832_s10, %s2235_s10   ;;  %s1743_s30 = sphi %s1830_s30, %s2234_s30  }
   0x7   : > { %2214 = sst [smem:[#allocation32_spill]] %s1763_s14  ;;  %p26_p0 = scmp.ge.s32.totalorder %s25_s16, 8 }
   0x8   : > { %s28_s17 = sadd.s32 1, %s1763_s14  ;;  %s2207_s18 = sadd.s32 4294967295, %s1767_s15  }
   0x9   : > { %s32_s19 = sshrl.u32 %s1759_s13, 3  ;;  %s2242_s16 = smov (%p26_p0, %s25_s16), 0 }
   0xa   : > { %2215 = sst [smem:[#allocation33_spill]] %s2242_s16  ;;  %s2244_s17 = smov (!%p26_p0, %s28_s17), %s1763_s14 }
   0xb   : > { %s33_s20 = sshrl.u32 %s2242_s16, 3  ;;  %p49_p1 = scmp.ne.s32.totalorder %s1747_s10, %s1743_s30 }
   0xc   : > { %p30_p2 = scmp.ge.s32.totalorder %s2244_s17, 16  ;;  %s35_s21 = ssub.s32 %s32_s19, %s33_s20 }
   0xd   : > { %p50_p3 = scmp.eq.s32.totalorder %s2207_s18, 127  ;;  %s39_s25 = sadd.s32 1, %s1747_s10 }
   0xe   : > { %s2246_s17 = smov (%p30_p2, %s2244_s17), 0  ;;  %p1556_p6 = scmp.ge.s32.totalorder %s1767_s15, 128 }
   0xf   : > { %2216 = sst [smem:[#allocation34_spill]] %s2246_s17  ;;  %p1879_p4 = por %p50_p3, %p49_p1 }
  0x10   : > { %s34_s23 = ssub.s32 %s1763_s14, %s2246_s17  ;;  %102 = sbr.rel (%p1556_p6) target bundleno = 28 (0x1c), region = 16 }
  0x11   : > { %s36_s24 = sor.u32 %s35_s21, %s34_s23  ;;  %s104_s27 = sand.u32 (!%p1556_p6), 1, %s1767_s15  }
  0x12   : > { %p37_p5 = scmp.eq.s32.totalorder %s36_s24, 0  ;;  %s1558_s28 = sshll.u32 (!%p1556_p6), %s1763_s14, 3 }
  0x13   : > { %s1557_s29 = sshll.u32 (!%p1556_p6), %s104_s27, 1  ;;  %s108_s19 = sadd.s32 (!%p1556_p6), %s1759_s13, %s1558_s28 }
  0x14   : > { %s1887_s26 = scalar_select %p37_p5, %s1747_s10, %s39_s25  }
  0x15   : > { %s1559_s20 = sshll.u32 (!%p1556_p6), %s108_s19, 1  ;;  %s106_s25 = scalar_lea.vmem (!%p1556_p6), [#allocation1], %s1557_s29 }
  0x16   : > { %2218 = sst [smem:[#allocation35_spill]] %s1887_s26  ;;  %s110_s17 = scalar_lea.vmem (!%p1556_p6), %s2197_s0, %s1559_s20 }
  0x17   : > { %v126_v0 = vld [vmem:[%s110_s17] sm:$0x3]  ;;  %s149_s24 = scalar_lea.vmem %s2198_s1, %s1559_s20  ;;  %s188_s9 = scalar_lea.vmem %s2199_s2, %s1559_s20 }
  0x18   : > { %127 = vst [vmem:[%s106_s25] sm:$0x3] %v126_v0  ;;  %v165_v1 = vld [vmem:[%s149_s24] sm:$0x3]  ;;  %s145_s14 = scalar_lea.vmem [#allocation3], %s1557_s29  ;;  %s227_s16 = scalar_lea.vmem %s2200_s3, %s1559_s20 }
  0x19   : > { %166 = vst [vmem:[%s145_s14] sm:$0x3] %v165_v1  ;;  %v204_v2 = vld [vmem:[%s188_s9] sm:$0x3]  ;;  %s184_s18 = scalar_lea.vmem [#allocation5], %s1557_s29  ;;  %s223_s17 = scalar_lea.vmem [#allocation7], %s1557_s29 }
  0x1a   : > { %205 = vst [vmem:[%s184_s18] sm:$0x3] %v204_v2  ;;  %v243_v3 = vld [vmem:[%s227_s16] sm:$0x3] }
  0x1b   : > { %244 = vst [vmem:[%s223_s17] sm:$0x3] %v243_v3 }
  0x1c PF: > { %p1569_p7 = scmp.ge.s32.totalorder %s1767_s15, 1  ;;  %p260_p8 = scmp.lt.s32.totalorder %s1767_s15, 129 }
  0x1e   : > { %p261_p9 = pnand %p1569_p7, %p260_p8 }
  0x20   : > { %264 = sbr.rel (%p261_p9) target bundleno = 1010 (0x3f2), region = 140 }
  0x27   : > { %s2219_s10 = sadd.s32 4294967295, %s1767_s15   ;;  %s301_s14 = sand.u32 1, %s1743_s30   ;;  %v361_v4 = vlaneseq  ;;  %v1777_v5 = vmov 0.0  }
  0x28   : > { %s283_s9 = sand.u32 1, %s2219_s10   ;;  %s1912_s29 = sshll.u32 %s301_s14, 3  ;;  %356 = vst [vmem:[#allocation10] sm:$0xff] %v1777_v5  ;;  %357 = vst [vmem:[#allocation12] sm:$0xff] %v1777_v5 }
  0x29   : > { %s1910_s26 = sshll.u32 %s283_s9, 1  ;;  %358 = vst [vmem:[#allocation14] sm:$0xff] %v1777_v5  ;;  %359 = vst [vmem:[#allocation16] sm:$0xff] %v1777_v5  ;;  %v1914_v6 = vand.u32 127, %v361_v4  ;;  %v1916_v7 = vshrl.u32 %v361_v4, 7  ;;  %s344_s23 = smov [#allocation18] }
  0x2a   : > { %s285_s19 = scalar_lea.vmem [#allocation1], %s1910_s26  ;;  %s289_s30 = scalar_lea.vmem [#allocation3], %s1910_s26 }
  0x2b   : > { %v328_v8 = vld [vmem:[%s285_s19] sm:$0x3]  ;;  %v332_v9 = vld [vmem:[%s289_s30] sm:$0x3]  ;;  %s293_s20 = scalar_lea.vmem [#allocation5], %s1910_s26  ;;  %s297_s21 = scalar_lea.vmem [#allocation7], %s1910_s26  ;;  %v363_v6 = vmov %v1914_v6  ;;  %v366_v7 = vmov %v1916_v7 }
  0x2c   : > { %329 = vst [vmem:[#allocation0] sm:$0x3] %v328_v8  ;;  %333 = vst [vmem:[#allocation2] sm:$0x3] %v332_v9  ;;  %v336_v10 = vld [vmem:[%s293_s20] sm:$0x3]  ;;  %v376_v6 = vmov %v1914_v6  ;;  %v379_v7 = vmov %v1916_v7  ;;  %vm370_vm0 = vcmp.eq.s32.totalorder %v366_v7, %v363_v6 }
  0x2d   : > { %v340_v11 = vld [vmem:[%s297_s21] sm:$0x3]  ;;  %337 = vst [vmem:[#allocation4] sm:$0x3] %v336_v10  ;;  %s347_s24 = smov [#allocation19]  ;;  %vm383_vm1 = vcmp.eq.s32.totalorder %v379_v7, %v376_v6  ;;  %s360_s25 = smov [#allocation10]  ;;  %v1428_v7 = vmov %v1916_v7 }
  0x2e   : > { %341 = vst [vmem:[#allocation6] sm:$0x3] %v340_v11  ;;  %s373_s27 = smov [#allocation16]  ;;  %s350_s28 = smov [#allocation20]  ;;  %vm1433_vm2 = vcmp.lt.s32.totalorder %v1914_v6, 2  ;;  %v1425_v6 = vmov %v1914_v6 }
  0x2f   : > { %s353_s16 = smov [#allocation21]  ;;  %v367_v12 = vld [vmem:[%s360_s25] sm:$0x3]  ;;  %s1429_s30 = smov [#allocation18]  ;;  %vm1438_vm3 = vcmp.eq.s32.totalorder %v1428_v7, %v1425_v6  ;;  %v1476_v6 = vmov %v1914_v6  ;;  %v1445_v7 = vmov %v1916_v7 }
  0x30   : > { %v380_v13 = vld [vmem:[%s373_s27] sm:$0x3]  ;;  %v371_v16 = vsel %vm370_vm0, 1.0, %v367_v12  ;;  %s1446_s20 = smov [#allocation19]  ;;  %s1463_s21 = smov [#allocation20]  ;;  %v1442_v6 = vmov %v1914_v6  ;;  %v1479_v7 = vmov %v1916_v7 }
  0x31   : > { %v384_v17 = vsel %vm383_vm1, 1.0, %v380_v13  ;;  %372 = vst [vmem:[%s360_s25] sm:$0x3] %v371_v16  ;;  %v1459_v6 = vmov %v1914_v6  ;;  %v1462_v7 = vmov %v1916_v7  ;;  %vm1489_vm4 = vcmp.eq.s32.totalorder %v1479_v7, %v1476_v6 }
  0x32   : > { %385 = vst [vmem:[%s373_s27] sm:$0x3] %v384_v17 }
  0x33   : > { %v345_v14 = vld [vmem:[#allocation0] sm:$0xff]  ;;  %v348_v15 = vld [vmem:[#allocation2] sm:$0xff] }
  0x34   : > { %346 = vst [vmem:[%s344_s23] sm:$0xff] %v345_v14  ;;  %349 = vst [vmem:[%s347_s24] sm:$0xff] %v348_v15  ;;  %v351_v18 = vld [vmem:[#allocation4] sm:$0xff]  ;;  %s1480_s23 = smov [#allocation21] }
  0x35   : > { %v354_v19 = vld [vmem:[#allocation6] sm:$0xff]  ;;  %352 = vst [vmem:[%s350_s28] sm:$0xff] %v351_v18 }
  0x36   : > { %355 = vst [vmem:[%s353_s16] sm:$0xff] %v354_v19 }
  0x3b   : > { %v1435_v20 = vld [vmem:[%s1429_s30] sm:$0x3] }
  0x3c   : > { %v1452_v21 = vld [vmem:[%s1446_s20] sm:$0x3]  ;;  %v1436_v22 = vsel %vm1433_vm2, %v1435_v20, 0.0 }
  0x3d   : > { %v1453_v23 = vsel %vm1433_vm2, %v1452_v21, 0.0  ;;  %v1469_v24 = vld [vmem:[%s1463_s21] sm:$0x3]  ;;  %v1437_v26 = vmul.f32 %v1436_v22, %v1436_v22 }
  0x3e   : > { %v1486_v25 = vld [vmem:[%s1480_s23] sm:$0x3]  ;;  %v1454_v27 = vmul.f32 %v1453_v23, %v1453_v23  ;;  %v1470_v28 = vsel %vm1433_vm2, %v1469_v24, 0.0 }
  0x3f   : > { %v1487_v29 = vsel %vm1433_vm2, %v1486_v25, 0.0  ;;  %v1471_v30 = vmul.f32 %v1470_v28, %v1470_v28  ;;  %v1439_v33 = vsel %vm1438_vm3, 0.0, %v1437_v26 }
  0x40   : > { %v1456_v31 = vadd.f32 %v1454_v27, %v1437_v26  ;;  %v1488_v32 = vmul.f32 %v1487_v29, %v1487_v29  ;;  %v1455_v34 = vadd.f32 %v1454_v27, %v1439_v33 }
  0x42   : > { %v1473_v35 = vadd.f32 %v1471_v30, %v1456_v31  ;;  %v1472_v36 = vadd.f32 %v1471_v30, %v1455_v34  ;;  %v1490_v37 = vsel %vm1489_vm4, 0.0, %v1488_v32 }
  0x44   : > { %v1492_v38 = vadd.f32 %v1488_v32, %v1473_v35  ;;  %v1491_v39 = vadd.f32 %v1490_v37, %v1472_v36 }
  0x46   : > { %1493 = vadd.xlane.f32.xlu0 %v1492_v38 }
  0x4a   : > { %1501 = vadd.xlane.f32.xlu0 %v1491_v39 }
  0xd3   : > { %v1494_v40 = vpop.xlane.xlu0 %1493 }
  0xd4   : > { %v1495_v41 = vrot.slane %v1494_v40, 4 }
  0xd6   : > { %v1496_v42 = vadd.f32 %v1495_v41, %v1494_v40 }
  0xd7   : > { %v1502_v43 = vpop.xlane.xlu0 %1501 }
  0xd8   : > { %v1497_v44 = vrot.slane %v1496_v42, 2  ;;  %v1503_v45 = vrot.slane %v1502_v43, 4 }
  0xda   : > { %v1504_v46 = vadd.f32 %v1503_v45, %v1502_v43  ;;  %v1498_v47 = vadd.f32 %v1497_v44, %v1496_v42 }
  0xdc   : > { %v1505_v48 = vrot.slane %v1504_v46, 2  ;;  %v1499_v50 = vrot.slane %v1498_v47, 1 }
  0xde   : > { %v1506_v49 = vadd.f32 %v1505_v48, %v1504_v46  ;;  %v1500_v53 = vadd.f32 %v1499_v50, %v1498_v47 }
  0xe0   : > { %v1507_v51 = vrot.slane %v1506_v49, 1 }
  0xe2   : > { %v1508_v52 = vadd.f32 %v1507_v51, %v1506_v49 }
  0xe4   : > { %1614 = vpush %v1508_v52 }
  0xe5   : > { %1616 = vpush %v1500_v53 }
 0x115   : > { %s1615_s24 = spop %1614 }
 0x116   : > { %s1617_s25 = spop %1616 }
 0x117   : > { %s1511_s27 = smul.f32 1e-10, %s1617_s25 }
 0x119   : > { %p1512_p10 = scmp.le.f32.partialorder %s1615_s24, %s1511_s27 }
 0x11a   : > { %s1950_s28 = smov (!%p1512_p10), 0  }
 0x11b   : > { %1515 = sbr.rel (%p1512_p10) target bundleno = 965 (0x3c5), region = 475 }
 0x122 LB: >> { %s1955_s16 = smov 0   ;;  %s1771_s28 = sphi %s1950_s28, %s2220_s28  }
 0x123 LB: >>> { %s490_s30 = smov [#allocation18]  ;;  %v494_v6 = vmov %v1914_v6  ;;  %v497_v7 = vmov %v1916_v7  ;;  %s510_s20 = smov [#allocation19]  ;;  %vm813_vm14 = vcmp.eq.s32.totalorder %v1916_v7, 0  ;;  %vm825_vm15 = vcmp.eq.s32.totalorder %v1916_v7, 1  ;;  %s1775_s16 = sphi %s1955_s16, %s489_s16  }
 0x124   : >>> { %v514_v6 = vmov %v1914_v6  ;;  %v517_v7 = vmov %v1916_v7  ;;  %v498_v54 = vld [vmem:[%s490_s30] sm:$0x3]  ;;  %vm501_vm5 = vcmp.eq.s32.totalorder %v497_v7, %v494_v6  ;;  %s530_s21 = smov [#allocation21]  ;;  %s491_s23 = smov [#allocation22] }
 0x125   : >>> { %vm521_vm6 = vcmp.eq.s32.totalorder %v517_v7, %v514_v6  ;;  %v534_v6 = vmov %v1914_v6  ;;  %v537_v7 = vmov %v1916_v7  ;;  %v502_v55 = vsel %vm501_vm5, %v498_v54, 0.0  ;;  %v518_v56 = vld [vmem:[%s510_s20] sm:$0x3]  ;;  %s511_s24 = smov [#allocation23]  ;;  %s531_s25 = smov [#allocation24] }
 0x126   : >>> { %vm541_vm7 = vcmp.eq.s32.totalorder %v537_v7, %v534_v6  ;;  %v503_v57 = vrot.slane %v502_v55, 4  ;;  %v522_v58 = vsel %vm521_vm6, %v518_v56, 0.0  ;;  %v538_v59 = vld [vmem:[%s530_s21] sm:$0x3]  ;;  %s554_s27 = smov [#allocation23]  ;;  %s552_s30 = smov [#allocation22]  ;;  %v603_v6 = vmov %v1914_v6 }
 0x127   : >>> { %v523_v60 = vrot.slane %v522_v58, 4  ;;  %v542_v61 = vsel %vm541_vm7, %v538_v59, 0.0  ;;  %s556_s20 = smov [#allocation24]  ;;  %s591_s21 = smov [#allocation25]  ;;  %v606_v7 = vmov %v1916_v7  ;;  %v618_v6 = vmov %v1914_v6 }
 0x128   : >>> { %v504_v62 = vadd.f32 %v503_v57, %v502_v55  ;;  %v543_v63 = vrot.slane %v542_v61, 4  ;;  %v621_v7 = vmov %v1916_v7  ;;  %vm608_vm12 = vcmp.eq.s32.totalorder %v606_v7, %v603_v6  ;;  %s1974_s17 = smov [#allocation20]  ;;  %s1980_s18 = smov [#allocation12] }
 0x129   : >>> { %v524_v0 = vadd.f32 %v523_v60, %v522_v58  ;;  %vm623_vm13 = vcmp.eq.s32.totalorder %v621_v7, %v618_v6  ;;  %s853_s19 = smov [#allocation29]  ;;  %s1986_s14 = smov [#allocation16]  ;;  %v639_v55 = vld [vmem:[%s1974_s17] sm:$0x3]  ;;  %v716_v6 = vmov %v1914_v6  ;;  %v719_v7 = vmov %v1916_v7 }
 0x12a   : >>> { %v505_v1 = vrot.slane %v504_v62, 2  ;;  %v544_v2 = vadd.f32 %v543_v63, %v542_v61  ;;  %v862_v58 = vld [vmem:[%s1980_s18] sm:$0x3]  ;;  %s631_s9 = smov [#allocation30]  ;;  %s855_s10 = smov [#allocation30]  ;;  %v730_v6 = vmov %v1914_v6  ;;  %v733_v7 = vmov %v1916_v7 }
 0x12b   : >>> { %v525_v3 = vrot.slane %v524_v0, 2  ;;  %v864_v61 = vld [vmem:[%s1986_s14] sm:$0x3]  ;;  %vm723_vm0 = vcmp.eq.s32.totalorder %v719_v7, %v716_v6  ;;  %v689_v6 = vmov %v1914_v6  ;;  %v692_v7 = vmov %v1916_v7  ;;  %s489_s16 = sadd.s32 1, %s1775_s16  }
 0x12c   : >>> { %v506_v4 = vadd.f32 %v505_v1, %v504_v62  ;;  %v545_v5 = vrot.slane %v544_v2, 2  ;;  %v703_v6 = vmov %v1914_v6  ;;  %v706_v7 = vmov %v1916_v7  ;;  %p486_p11 = scmp.ge.s32.totalorder %s489_s16, 3  }
 0x12d   : >>> { %v526_v8 = vadd.f32 %v525_v3, %v524_v0  ;;  %vm738_vm1 = vcmp.eq.s32.totalorder %v733_v7, %v730_v6  ;;  %vm697_vm3 = vcmp.eq.s32.totalorder %v692_v7, %v689_v6  ;;  %vm710_vm4 = vcmp.eq.s32.totalorder %v706_v7, %v703_v6 }
 0x12e   : >>> { %v507_v9 = vrot.slane %v506_v4, 1  ;;  %v546_v10 = vadd.f32 %v545_v5, %v544_v2  ;;  %vm752_vm5 = vcmp.eq.s32.totalorder %v1914_v6, 0  ;;  %vm756_vm6 = vcmp.eq.s32.totalorder %v1914_v6, 1 }
 0x12f   : >>> { %v527_v11 = vrot.slane %v526_v8, 1  ;;  %v390_v6 = vmov (%p486_p11), %v1914_v6  ;;  %v393_v7 = vmov (%p486_p11), %v1916_v7 }
 0x130   : >>> { %v508_v12 = vadd.f32 %v507_v9, %v506_v4  ;;  %v547_v13 = vrot.slane %v546_v10, 1  ;;  %v443_v6 = vmov (%p486_p11), %v1914_v6  ;;  %vm405_vm7 = vcmp.eq.s32.totalorder (%p486_p11), %v393_v7, %v390_v6 }
 0x131   : >>> { %v528_v14 = vadd.f32 %v527_v11, %v526_v8  ;;  %v446_v7 = vmov (%p486_p11), %v1916_v7  ;;  %v409_v6 = vmov (%p486_p11), %v1914_v6 }
 0x132   : >>> { %509 = vst [vmem:[%s491_s23] sm:$0x1] %v508_v12  ;;  %v548_v15 = vadd.f32 %v547_v13, %v546_v10  ;;  %s593_s23 = smov [#allocation26]  ;;  %v412_v7 = vmov (%p486_p11), %v1916_v7  ;;  %v426_v6 = vmov (%p486_p11), %v1914_v6 }
 0x133   : >>> { %529 = vst [vmem:[%s511_s24] sm:$0x1] %v528_v14  ;;  %s550_s24 = smov [#allocation27]  ;;  %v429_v7 = vmov (%p486_p11), %v1916_v7 }
 0x134   : >>> { %549 = vst [vmem:[%s531_s25] sm:$0x1] %v548_v15  ;;  %s551_s25 = smov [#allocation28]  ;;  %s595_s24 = smov %s550_s24 }
 0x135   : >>> { %s597_s25 = smov %s551_s25 }
 0x139   : >>> { %v553_v18 = vld [vmem:[%s552_s30] sm:$0xff]  ;;  %s614_s30 = smov [#allocation28] }
 0x13a   : >>> { %v555_v16 = vld [vmem:[%s554_s27] sm:$0xff]  ;;  %v576_v31 = vand.u32 2147483647, %v553_v18  ;;  %s599_s27 = smov [#allocation27] }
 0x13b   : >>> { %v559_v17 = vmul.f32 2.0, %v555_v16  ;;  %v557_v19 = vld [vmem:[%s556_s20] sm:$0xff]  ;;  %v577_v36 = vand.u32 2147483647, %v555_v16  ;;  %s612_s20 = smov [#allocation29] }
 0x13c   : >>> { %v558_v20 = vsub.f32 %v557_v19, %v553_v18  ;;  %v578_v32 = vand.u32 2147483647, %v557_v19 }
 0x13d   : >>> { %1697 = vrcp.f32 %v559_v17 }
 0x13e   : >>> { %v579_v35 = vmin.f32 %v576_v31, %v578_v32 }
 0x140   : >>> { %v580_v37 = vmul.f32 1.1920929e-08, %v579_v35 }
 0x142   : >>> { %vm581_vm11 = vcmp.le.f32.partialorder %v577_v36, %v580_v37 }
 0x147   : >>> { %v1698_v21 = vpop.eup %1697 }
 0x148   : >>> { %v561_v22 = vmul.f32 %v1698_v21, %v558_v20 }
 0x14a   : >>> { %v563_v23 = vmul.f32 %v561_v22, %v561_v22  ;;  %vm562_vm10 = vcmp.ge.f32.partialorder %v561_v22, 0.0 }
 0x14c   : >>> { %v564_v24 = vadd.f32 1.0, %v563_v23 }
 0x14e   : >>> { %1699 = vrsqrt.f32 %v564_v24  ;;  %vm567_vm8 = vcmp.eq.f32.partialorder %v564_v24, inf  ;;  %v570_v26 = vand.u32 2147483648, %v564_v24  ;;  %vm569_vm9 = vcmp.eq.f32.partialorder %v564_v24, 0.0 }
 0x158   : >>> { %v1700_v25 = vpop.eup %1699 }
 0x159   : >>> { %v566_v27 = vmul.f32 %v1700_v25, %v564_v24 }
 0x15b   : >>> { %v568_v28 = vsel %vm567_vm8, %v564_v24, %v566_v27  ;;  %vm458_vm8 = vcmp.eq.s32.totalorder (%p486_p11), %v446_v7, %v443_v6 }
 0x15c   : >>> { %v571_v29 = vsel %vm569_vm9, %v570_v26, %v568_v28 }
 0x15d   : >>> { %v572_v30 = vxor.u32 2147483648, %v571_v29 }
 0x15f   : >>> { %v573_v33 = vsel %vm562_vm10, %v571_v29, %v572_v30 }
 0x160   : >>> { %v574_v34 = vadd.f32 %v573_v33, %v561_v22 }
 0x162   : >>> { %1701 = vrcp.f32 %v574_v34 }
 0x16c   : >>> { %v1702_v38 = vpop.eup %1701 }
 0x16d   : >>> { %v582_v39 = vsel %vm581_vm11, 0.0, %v1702_v38 }
 0x16e   : >>> { %v583_v40 = vmul.f32 %v582_v39, %v582_v39  ;;  %v587_v41 = vmul.f32 %v582_v39, %v555_v16 }
 0x170   : >>> { %v584_v42 = vadd.f32 1.0, %v583_v40  ;;  %v588_v43 = vsub.f32 %v553_v18, %v587_v41  ;;  %v590_v44 = vadd.f32 %v587_v41, %v557_v19 }
 0x172   : >>> { %1703 = vrsqrt.f32 %v584_v42  ;;  %592 = vst [vmem:[%s591_s21] sm:$0xff] %v588_v43  ;;  %594 = vst [vmem:[%s593_s23] sm:$0xff] %v590_v44  ;;  %s629_s21 = smov [#allocation29]  ;;  %s1970_s23 = smov [#allocation18] }
 0x173   : >>> { %v637_v53 = vld [vmem:[%s1970_s23] sm:$0x3] }
 0x17c   : >>> { %v1704_v45 = vpop.eup %1703 }
 0x17d   : >>> { %596 = vst [vmem:[%s595_s24] sm:$0xff] %v1704_v45  ;;  %v586_v46 = vmul.f32 %v1704_v45, %v582_v39  ;;  %s627_s24 = smov [#allocation30] }
 0x17f   : >>> { %598 = vst [vmem:[%s597_s25] sm:$0xff] %v586_v46  ;;  %s1972_s25 = smov [#allocation19] }
 0x180   : >>> { %v638_v54 = vld [vmem:[%s1972_s25] sm:$0x3] }
 0x184   : >>> { %v600_v47 = vld [vmem:[%s599_s27] ss:$0 sm:$0xff]  ;;  %s1976_s27 = smov [#allocation21] }
 0x185   : >>> { %v609_v48 = vsel %vm608_vm12, %v600_v47, 0.0  ;;  %v640_v56 = vld [vmem:[%s1976_s27] sm:$0x3] }
 0x186   : >>> { %610 = vadd.xlane.f32.xlu0 %v609_v48  ;;  %v615_v49 = vld [vmem:[%s614_s30] ss:$0 sm:$0xff]  ;;  %s1978_s30 = smov [#allocation10] }
 0x187   : >>> { %v624_v50 = vsel %vm623_vm13, %v615_v49, 0.0  ;;  %v861_v57 = vld [vmem:[%s1978_s30] sm:$0x3] }
 0x18a   : >>> { %625 = vadd.xlane.f32.xlu0 %v624_v50 }
 0x213   : >>> { %v611_v51 = vpop.xlane.xlu0 %610 }
 0x214   : >>> { %613 = vst [vmem:[%s612_s20] sm:$0xff] %v611_v51  ;;  %s1982_s20 = smov [#allocation14] }
 0x215   : >>> { %v863_v59 = vld [vmem:[%s1982_s20] sm:$0x3] }
 0x217   : >>> { %v626_v52 = vpop.xlane.xlu0 %625 }
 0x218   : >>> { %628 = vst [vmem:[%s627_s24] sm:$0xff] %v626_v52  ;;  %s2006_s24 = smov [#allocation21] }
 0x21b   : >>> { %v630_v60 = vld [vmem:[%s629_s21] sm:$0xff]  ;;  %s2004_s21 = smov [#allocation20] }
 0x21c   : >>> { %v854_v62 = vld [vmem:[%s853_s19] sm:$0xff]  ;;  %v641_v63 = vmul.f32 %v637_v53, %v630_v60  ;;  %v644_v0 = vmul.f32 %v638_v54, %v630_v60  ;;  %v648_v1 = vmul.f32 %v639_v55, %v630_v60  ;;  %v651_v2 = vmul.f32 %v640_v56, %v630_v60  ;;  %s2002_s19 = smov [#allocation10] }
 0x21d   : >>> { %v865_v3 = vmul.f32 %v861_v57, %v854_v62  ;;  %v868_v4 = vmul.f32 %v862_v58, %v854_v62  ;;  %v872_v5 = vmul.f32 %v863_v59, %v854_v62  ;;  %v875_v8 = vmul.f32 %v864_v61, %v854_v62 }
 0x21f   : >>> { %v632_v9 = vld [vmem:[%s631_s9] sm:$0xff]  ;;  %s659_s9 = smov [#allocation28] }
 0x220   : >>> { %v856_v10 = vld [vmem:[%s855_s10] sm:$0xff]  ;;  %v642_v11 = vmul.f32 %v639_v55, %v632_v9  ;;  %v645_v12 = vmul.f32 %v640_v56, %v632_v9  ;;  %v647_v13 = vmul.f32 %v637_v53, %v632_v9  ;;  %v650_v14 = vmul.f32 %v638_v54, %v632_v9  ;;  %s657_s10 = smov [#allocation27] }
 0x221   : >>> { %v866_v15 = vmul.f32 %v863_v59, %v856_v10  ;;  %v869_v16 = vmul.f32 %v864_v61, %v856_v10  ;;  %v871_v17 = vmul.f32 %v861_v57, %v856_v10  ;;  %v874_v18 = vmul.f32 %v862_v58, %v856_v10  ;;  %v658_v27 = vld [vmem:[%s657_s10] ss:$0 sm:$0xff]  ;;  %s686_s10 = smov [#allocation25] }
 0x222   : >>> { %v643_v19 = vsub.f32 %v641_v63, %v642_v11  ;;  %v646_v20 = vsub.f32 %v644_v0, %v645_v12  ;;  %v649_v21 = vadd.f32 %v648_v1, %v647_v13  ;;  %v652_v22 = vadd.f32 %v651_v2, %v650_v14  ;;  %v660_v28 = vld [vmem:[%s659_s9] ss:$0 sm:$0xff]  ;;  %s685_s9 = smov [#allocation18] }
 0x223   : >>> { %v867_v23 = vsub.f32 %v865_v3, %v866_v15  ;;  %v870_v24 = vsub.f32 %v868_v4, %v869_v16  ;;  %v873_v25 = vadd.f32 %v872_v5, %v871_v17  ;;  %v876_v26 = vadd.f32 %v875_v8, %v874_v18  ;;  %v693_v63 = vld [vmem:[%s686_s10] ss:$0 sm:$0xff]  ;;  %s929_s10 = sadd.s32 (%p486_p11), 1, %s1771_s28  }
 0x224   : >>> { %654 = vst [vmem:[%s1972_s25] sm:$0x3] %v646_v20  ;;  %656 = vst [vmem:[%s1976_s27] sm:$0x3] %v652_v22  ;;  %s2008_s25 = smov [#allocation18]  ;;  %s727_s27 = smov [#allocation26] }
 0x225   : >>> { %653 = vst [vmem:[%s1970_s23] sm:$0x3] %v643_v19  ;;  %655 = vst [vmem:[%s1974_s17] sm:$0x3] %v649_v21  ;;  %s2010_s17 = smov [#allocation14]  ;;  %s2018_s23 = smov [#allocation19]  ;;  %v734_v59 = vld [vmem:[%s727_s27] ss:$0 sm:$0xff] }
 0x226   : >>> { %877 = vst [vmem:[%s1978_s30] sm:$0x3] %v867_v23  ;;  %878 = vst [vmem:[%s1980_s18] sm:$0x3] %v870_v24  ;;  %s2012_s18 = smov [#allocation12]  ;;  %s713_s30 = smov [#allocation20] }
 0x227   : >>> { %879 = vst [vmem:[%s1982_s20] sm:$0x3] %v873_v25  ;;  %880 = vst [vmem:[%s1986_s14] sm:$0x3] %v876_v26  ;;  %s2016_s14 = smov [#allocation16]  ;;  %s726_s20 = smov [#allocation21] }
 0x228   : >>> { %s829_s27 = smov [#allocation19]  ;;  %p482_p12 = scmp.ge.s32.totalorder (%p486_p11), %s929_s10, 15 }
 0x229   : >> { %s2220_s28 = smov (%p486_p11), %s929_s10 }
 0x22b   : >>> { %v668_v30 = vld [vmem:[%s2006_s24] sm:$0x3] }
 0x22c   : >>> { %v667_v29 = vld [vmem:[%s2004_s21] sm:$0x3]  ;;  %v676_v36 = vmul.f32 %v668_v30, %v660_v28  ;;  %v679_v42 = vmul.f32 %v668_v30, %v658_v27 }
 0x22d   : >>> { %v665_v31 = vld [vmem:[%s2008_s25] sm:$0x3]  ;;  %v675_v35 = vmul.f32 %v667_v29, %v658_v27  ;;  %v678_v37 = vmul.f32 %v667_v29, %v660_v28 }
 0x22e   : >>> { %v883_v32 = vld [vmem:[%s2002_s19] ss:$0 sm:$0xff]  ;;  %v1589_v34 = vld [vmem:[%s2002_s19 + $0x1] ss:$0 sm:$0xff]  ;;  %v669_v48 = vmul.f32 %v665_v31, %v658_v27  ;;  %v672_v49 = vmul.f32 %v665_v31, %v660_v28 }
 0x22f   : >>> { %v1588_v33 = vld [vmem:[%s2002_s19 - $0x1] sm:$0x2]  ;;  %v1591_v40 = vld [vmem:[%s2010_s17 + $0x1] sm:$0x1]  ;;  %v677_v47 = vsub.f32 %v675_v35, %v676_v36  ;;  %v680_v53 = vadd.f32 %v679_v42, %v678_v37 }
 0x230   : >>> { %v890_v38 = vsel %vm813_vm14, %v883_v32, %v1588_v33  ;;  %v894_v39 = vld [vmem:[%s2010_s17] ss:$0 sm:$0xff]  ;;  %v902_v43 = vsel %vm825_vm15, %v1589_v34, %v1591_v40  ;;  %v1593_v45 = vld [vmem:[%s2012_s18 + $0x1] ss:$0 sm:$0xff] }
 0x231   : >>> { %v907_v41 = vld [vmem:[%s2012_s18] ss:$0 sm:$0xff]  ;;  %893 = vst [vmem:[%s2002_s19] sm:$0x3] %v890_v38  ;;  %904 = vst [vmem:[%s2010_s17] sm:$0x3] %v902_v43  ;;  %v1595_v51 = vld [vmem:[%s2016_s14 + $0x1] sm:$0x1] }
 0x232   : >>> { %v1592_v44 = vld [vmem:[%s2012_s18 - $0x1] sm:$0x2]  ;;  %1590 = vst [vmem:[%s2002_s19 + $0x1] sm:$0x1] %v894_v39  ;;  %v926_v54 = vsel %vm825_vm15, %v1593_v45, %v1595_v51  ;;  %683 = vst [vmem:[%s2004_s21] sm:$0x3] %v677_v47  ;;  %s700_s19 = smov [#allocation19] }
 0x233   : >>> { %v918_v46 = vld [vmem:[%s2016_s14] ss:$0 sm:$0xff]  ;;  %v914_v50 = vsel %vm813_vm14, %v907_v41, %v1592_v44  ;;  %684 = vst [vmem:[%s2006_s24] sm:$0x3] %v680_v53  ;;  %s2060_s21 = smov [#allocation20]  ;;  %s1778_s24 = smov 1  }
 0x234   : >>> { %v666_v52 = vld [vmem:[%s2018_s23] sm:$0x3]  ;;  %917 = vst [vmem:[%s2012_s18] sm:$0x3] %v914_v50  ;;  %928 = vst [vmem:[%s2016_s14] sm:$0x3] %v926_v54  ;;  %s742_s17 = smov [#allocation19]  ;;  %s2063_s14 = smov [#allocation21] }
 0x235   : >>> { %v670_v55 = vmul.f32 %v666_v52, %v660_v28  ;;  %v673_v56 = vmul.f32 %v666_v52, %v658_v27  ;;  %1594 = vst [vmem:[%s2012_s18 + $0x1] sm:$0x1] %v918_v46  ;;  %s1779_s18 = smov 127  }
 0x237   : >>> { %v671_v57 = vsub.f32 %v669_v48, %v670_v55  ;;  %v674_v58 = vadd.f32 %v673_v56, %v672_v49 }
 0x239   : >>> { %681 = vst [vmem:[%s2008_s25] sm:$0x3] %v671_v57  ;;  %682 = vst [vmem:[%s2018_s23] sm:$0x3] %v674_v58  ;;  %v720_v60 = vld [vmem:[%s713_s30] sm:$0x3]  ;;  %s741_s25 = smov [#allocation18]  ;;  %s805_s23 = smov [#allocation18] }
 0x23a   : >>> { %v724_v61 = vsel %vm723_vm0, 0.0, %v720_v60  ;;  %v735_v62 = vld [vmem:[%s726_s20] sm:$0x3] }
 0x23b   : >>> { %725 = vst [vmem:[%s713_s30] sm:$0x3] %v724_v61  ;;  %v739_v0 = vsel %vm738_vm1, %v734_v59, %v735_v62  ;;  %s806_s30 = smov [#allocation20] }
 0x23c   : >>> { %740 = vst [vmem:[%s726_s20] sm:$0x3] %v739_v0  ;;  %s830_s20 = smov [#allocation21] }
 0x240   : >>> { %v694_v1 = vld [vmem:[%s685_s9] sm:$0x3] }
 0x241   : >>> { %v707_v2 = vld [vmem:[%s700_s19] sm:$0x3]  ;;  %v698_v3 = vsel %vm697_vm3, %v693_v63, %v694_v1 }
 0x242   : >>> { %v711_v4 = vsel %vm710_vm4, 0.0, %v707_v2  ;;  %699 = vst [vmem:[%s685_s9] sm:$0x3] %v698_v3  ;;  %v779_v5 = vld [vmem:[%s2060_s21] sm:$0x3]  ;;  %s394_s9 = smov (%p486_p11), [#allocation18] }
 0x243   : >>> { %712 = vst [vmem:[%s700_s19] sm:$0x3] %v711_v4  ;;  %780 = vrot.lane.b32.xlu0 %v779_v5, %s1778_s24  ;;  %v775_v11 = vld [vmem:[%s2063_s14] sm:$0x3]  ;;  %s413_s19 = smov (%p486_p11), [#allocation19] }
 0x244   : >>> { %v796_v12 = vld [vmem:[%s2063_s14] sm:$0x3] }
 0x245   : >>> { %v778_v30 = vld [vmem:[%s2060_s21] sm:$0x3] }
 0x249   : >>> { %v747_v8 = vld [vmem:[%s741_s25] sm:$0x3] }
 0x24a   : >>> { %748 = vrot.lane.b32.xlu1 %v747_v8, %s1778_s24  ;;  %v743_v9 = vld [vmem:[%s742_s17] sm:$0x3] }
 0x24b   : >>> { %v764_v10 = vld [vmem:[%s742_s17] sm:$0x3] }
 0x24c   : >>> { %v746_v18 = vld [vmem:[%s741_s25] sm:$0x3] }
 0x24e   : >>> { %744 = vrot.lane.b32.xlu1 %v743_v9, %s1778_s24 }
 0x252   : >>> { %765 = vrot.lane.b32.xlu1 %v764_v10, %s1779_s18 }
 0x256   : >>> { %776 = vrot.lane.b32.xlu1 %v775_v11, %s1778_s24  ;;  %s447_s24 = smov (%p486_p11), [#allocation21] }
 0x25a   : >>> { %797 = vrot.lane.b32.xlu1 %v796_v12, %s1779_s18 }
 0x2b5   : >>> { %v781_v20 = vpop.permute.xlu0 %780 }
 0x2b6   : >>> { %v785_v22 = vsel %vm752_vm5, %v779_v5, %v781_v20 }
 0x2bc   : >>> { %v749_v13 = vpop.permute.xlu1 %748 }
 0x2bd   : >>> { %v753_v14 = vsel %vm752_vm5, %v747_v8, %v749_v13 }
 0x2c0   : >>> { %v745_v15 = vpop.permute.xlu1 %744 }
 0x2c1   : >>> { %v757_v16 = vsel %vm756_vm6, %v745_v15, %v753_v14 }
 0x2c2   : >>> { %v763_v17 = vsel %vm1433_vm2, %v757_v16, 0.0 }
 0x2c3   : >>> { %771 = vst [vmem:[%s741_s25] sm:$0x3] %v763_v17 }
 0x2c4   : >>> { %v766_v19 = vpop.permute.xlu1 %765 }
 0x2c5   : >>> { %v770_v21 = vsel %vm756_vm6, %v746_v18, %v766_v19 }
 0x2c6   : >>> { %772 = vst [vmem:[%s742_s17] sm:$0x3] %v770_v21 }
 0x2c8   : >>> { %v777_v23 = vpop.permute.xlu1 %776 }
 0x2c9   : >>> { %v789_v24 = vsel %vm756_vm6, %v777_v23, %v785_v22 }
 0x2ca   : >>> { %v807_v25 = vld [vmem:[%s805_s23] ss:$0 sm:$0xff]  ;;  %v1581_v27 = vld [vmem:[%s805_s23 + $0x1] ss:$0 sm:$0xff]  ;;  %v795_v29 = vsel %vm1433_vm2, %v789_v24, 0.0 }
 0x2cb   : >>> { %v1580_v26 = vld [vmem:[%s805_s23 - $0x1] sm:$0x2]  ;;  %803 = vst [vmem:[%s2060_s21] sm:$0x3] %v795_v29  ;;  %s430_s21 = smov (%p486_p11), [#allocation20] }
 0x2cc   : >>> { %v814_v28 = vsel %vm813_vm14, %v807_v25, %v1580_v26  ;;  %v798_v31 = vpop.permute.xlu1 %797 }
 0x2cd   : >>> { %817 = vst [vmem:[%s805_s23] sm:$0x3] %v814_v28  ;;  %v831_v32 = vld [vmem:[%s829_s27] ss:$0 sm:$0xff]  ;;  %v1585_v34 = vld [vmem:[%s829_s27 + $0x1] ss:$0 sm:$0xff]  ;;  %v802_v35 = vsel %vm756_vm6, %v778_v30, %v798_v31 }
 0x2ce   : >>> { %v1584_v33 = vld [vmem:[%s829_s27 - $0x1] sm:$0x2]  ;;  %804 = vst [vmem:[%s2063_s14] sm:$0x3] %v802_v35 }
 0x2cf   : >>> { %v838_v36 = vsel %vm813_vm14, %v831_v32, %v1584_v33 }
 0x2d0   : >>> { %841 = vst [vmem:[%s829_s27] sm:$0x3] %v838_v36 }
 0x2d2   : >>> { %v818_v37 = vld [vmem:[%s806_s30] ss:$0 sm:$0xff]  ;;  %v1583_v38 = vld [vmem:[%s806_s30 + $0x1] sm:$0x1] }
 0x2d3   : >>> { %1582 = vst [vmem:[%s805_s23 + $0x1] sm:$0x1] %v818_v37  ;;  %v826_v39 = vsel %vm825_vm15, %v1581_v27, %v1583_v38  ;;  %488 = sbr.rel (!%p486_p11) target bundleno = 291 (0x123), region = 470 }
 0x2d4   : >>> { %828 = vst [vmem:[%s806_s30] sm:$0x3] %v826_v39 }
 0x2d5   : >>> { %v842_v40 = vld [vmem:[%s830_s20] ss:$0 sm:$0xff]  ;;  %v1587_v41 = vld [vmem:[%s830_s20 + $0x1] sm:$0x1] }
 0x2d6   : >>> { %1586 = vst [vmem:[%s829_s27 + $0x1] sm:$0x1] %v842_v40  ;;  %v850_v42 = vsel %vm825_vm15, %v1585_v34, %v1587_v41 }
 0x2d7   : >>> { %852 = vst [vmem:[%s830_s20] sm:$0x3] %v850_v42 }
 0x2da   : >> { %v400_v43 = vld [vmem:[%s394_s9] sm:$0x3] }
 0x2db   : >> { %v401_v45 = vsel %vm1433_vm2, %v400_v43, 0.0  ;;  %v436_v47 = vld [vmem:[%s430_s21] sm:$0x3] }
 0x2dc   : >> { %v402_v49 = vmul.f32 %v401_v45, %v401_v45  ;;  %v437_v51 = vsel %vm1433_vm2, %v436_v47, 0.0 }
 0x2dd   : >> { %v419_v44 = vld [vmem:[%s413_s19] sm:$0x3]  ;;  %v438_v53 = vmul.f32 %v437_v51, %v437_v51 }
 0x2de   : >> { %v420_v46 = vsel %vm1433_vm2, %v419_v44, 0.0  ;;  %v453_v48 = vld [vmem:[%s447_s24] sm:$0x3]  ;;  %v406_v56 = vsel %vm405_vm7, 0.0, %v402_v49 }
 0x2df   : >> { %v421_v50 = vmul.f32 %v420_v46, %v420_v46  ;;  %v454_v52 = vsel %vm1433_vm2, %v453_v48, 0.0 }
 0x2e0   : >> { %v455_v55 = vmul.f32 %v454_v52, %v454_v52 }
 0x2e1   : >> { %v423_v54 = vadd.f32 %v421_v50, %v402_v49  ;;  %v422_v57 = vadd.f32 %v421_v50, %v406_v56 }
 0x2e2   : >> { %v459_v60 = vsel %vm458_vm8, 0.0, %v455_v55 }
 0x2e3   : >> { %v440_v58 = vadd.f32 %v438_v53, %v423_v54  ;;  %v439_v59 = vadd.f32 %v438_v53, %v422_v57 }
 0x2e5   : >> { %v461_v61 = vadd.f32 %v455_v55, %v440_v58  ;;  %v460_v62 = vadd.f32 %v459_v60, %v439_v59 }
 0x2e7   : >> { %462 = vadd.xlane.f32.xlu0 %v461_v61 }
 0x2eb   : >> { %470 = vadd.xlane.f32.xlu0 %v460_v62 }
 0x374   : >> { %v463_v63 = vpop.xlane.xlu0 %462 }
 0x375   : >> { %v464_v0 = vrot.slane %v463_v63, 4 }
 0x377   : >> { %v465_v1 = vadd.f32 %v464_v0, %v463_v63 }
 0x378   : >> { %v471_v2 = vpop.xlane.xlu0 %470 }
 0x379   : >> { %v466_v3 = vrot.slane %v465_v1, 2  ;;  %v472_v4 = vrot.slane %v471_v2, 4 }
 0x37b   : >> { %v473_v5 = vadd.f32 %v472_v4, %v471_v2  ;;  %v467_v8 = vadd.f32 %v466_v3, %v465_v1 }
 0x37d   : >> { %v474_v9 = vrot.slane %v473_v5, 2  ;;  %v468_v11 = vrot.slane %v467_v8, 1 }
 0x37f   : >> { %v475_v10 = vadd.f32 %v474_v9, %v473_v5  ;;  %v469_v14 = vadd.f32 %v468_v11, %v467_v8 }
 0x381   : >> { %v476_v12 = vrot.slane %v475_v10, 1 }
 0x383   : >> { %v477_v13 = vadd.f32 %v476_v12, %v475_v10 }
 0x385   : >> { %1618 = vpush %v477_v13 }
 0x386   : >> { %1620 = vpush %v469_v14 }
 0x3b6   : >> { %s1619_s16 = spop %1618 }
 0x3b7   : >> { %s1621_s25 = spop %1620 }
 0x3b8   : >> { %s480_s17 = smul.f32 1e-10, %s1621_s25 }
 0x3ba   : >> { %p481_p13 = scmp.le.f32.partialorder %s1619_s16, %s480_s17 }
 0x3bc   : >> { %p483_p0 = por %p482_p12, %p481_p13 }
 0x3be   : > { %931 = sbr.rel (!%p483_p0) target bundleno = 290 (0x122), region = 481 }
 0x3c5 PF: > { %s936_s18 = smov [#allocation18]  ;;  %v940_v6 = vmov %v1914_v6  ;;  %v943_v7 = vmov %v1916_v7  ;;  %v979_v15 = vld [vmem:[#allocation10] sm:$0x3]  ;;  %v985_v16 = vld [vmem:[#allocation12] sm:$0x3]  ;;  %s2221_s28 = scalar_lea.vmem [#allocation11], %s1910_s26 }
 0x3c6   : > { %v960_v6 = vmov %v1914_v6  ;;  %v963_v7 = vmov %v1916_v7  ;;  %v944_v17 = vld [vmem:[%s936_s18] sm:$0x3]  ;;  %vm947_vm9 = vcmp.eq.s32.totalorder %v943_v7, %v940_v6  ;;  %981 = vst [vmem:[%s2221_s28] sm:$0x3] %v979_v15  ;;  %s2222_s14 = scalar_lea.vmem [#allocation13], %s1910_s26  ;;  %v991_v18 = vld [vmem:[#allocation14] sm:$0x3] }
 0x3c7   : > { %vm967_vm10 = vcmp.eq.s32.totalorder %v963_v7, %v960_v6  ;;  %987 = vst [vmem:[%s2222_s14] sm:$0x3] %v985_v16  ;;  %v997_v19 = vld [vmem:[#allocation16] sm:$0x3]  ;;  %v948_v20 = vsel %vm947_vm9, %v944_v17, 0.0  ;;  %s956_s23 = smov [#allocation21]  ;;  %s2223_s27 = scalar_lea.vmem [#allocation15], %s1910_s26 }
 0x3c8   : > { %993 = vst [vmem:[%s2223_s27] sm:$0x3] %v991_v18  ;;  %s2224_s30 = scalar_lea.vmem [#allocation17], %s1910_s26  ;;  %v949_v21 = vrot.slane %v948_v20, 4  ;;  %v964_v22 = vld [vmem:[%s956_s23] sm:$0x3]  ;;  %s932_s20 = sand.u32 7, %s1751_s11  }
 0x3c9   : > { %999 = vst [vmem:[%s2224_s30] sm:$0x3] %v997_v19  ;;  %v968_v23 = vsel %vm967_vm10, %v964_v22, 0.0  ;;  %s2225_s10 = scalar_lea.vmem [#allocation8], %s1912_s29  ;;  %s2226_s19 = scalar_lea.vmem [#allocation9], %s1912_s29 }
 0x3ca   : > { %v950_v24 = vadd.f32 %v949_v21, %v948_v20  ;;  %v969_v25 = vrot.slane %v968_v23, 4  ;;  %s933_s9 = scalar_lea.vmem %s2225_s10, %s932_s20 [#allocation8]  ;;  %s935_s21 = scalar_lea.vmem %s2226_s19, %s932_s20 [#allocation9] }
 0x3cb   : > { %s937_s9 = smov %s933_s9  ;;  %s957_s21 = smov %s935_s21 }
 0x3cc   : > { %v951_v6 = vrot.slane %v950_v24, 2  ;;  %v970_v7 = vadd.f32 %v969_v25, %v968_v23  ;;  %s1027_s24 = sshrl.u32 (%p1879_p4), %s1751_s11, 3  ;;  %s2227_s25 = scalar_lea.vmem (%p1879_p4), [#allocation8], %s1912_s29 }
 0x3cd   : > { %s1028_s16 = sadd.s32 (%p1879_p4), %s1755_s12, %s1027_s24 }
 0x3ce   : > { %v952_v26 = vadd.f32 %v951_v6, %v950_v24  ;;  %v971_v27 = vrot.slane %v970_v7, 2  ;;  %s1602_s17 = sshll.u32 (%p1879_p4), %s1028_s16, 3 }
 0x3cf   : > { %s1030_s14 = scalar_lea.vmem (%p1879_p4), %s2201_s4, %s1602_s17 }
 0x3d0   : > { %v953_v28 = vrot.slane %v952_v26, 1  ;;  %v972_v29 = vadd.f32 %v971_v27, %v970_v7  ;;  %1026 = sbr.rel (!%p1879_p4) target bundleno = 989 (0x3dd), region = 158 }
 0x3d2   : > { %v954_v30 = vadd.f32 %v953_v28, %v952_v26  ;;  %v973_v31 = vrot.slane %v972_v29, 1 }
 0x3d4   : > { %955 = vst [vmem:[%s937_s9] sm:$0x1] %v954_v30  ;;  %v974_v32 = vadd.f32 %v973_v31, %v972_v29 }
 0x3d6   : > { %975 = vst [vmem:[%s957_s21] sm:$0x1] %v974_v32 }
 0x3db   : > { %v1058_v33 = vld [vmem:[%s2227_s25] sm:$0xff] }
 0x3dc   : > { %1059 = vst [vmem:[%s1030_s14] sm:$0xff] %v1058_v33 }
 0x3dd PF: > { %1065 = sbr.rel (!%p1879_p4) target bundleno = 997 (0x3e5), region = 196  ;;  %s1066_s23 = sshrl.u32 (%p1879_p4), %s1751_s11, 3 }
 0x3de   : > { %s1067_s27 = sadd.s32 (%p1879_p4), %s1755_s12, %s1066_s23  ;;  %s2228_s30 = scalar_lea.vmem (%p1879_p4), [#allocation9], %s1912_s29 }
 0x3df   : > { %s1603_s20 = sshll.u32 (%p1879_p4), %s1067_s27, 3 }
 0x3e0   : > { %s1069_s19 = scalar_lea.vmem (%p1879_p4), %s2202_s5, %s1603_s20 }
 0x3e3   : > { %v1097_v34 = vld [vmem:[%s2228_s30] sm:$0xff] (%p1879_p4) }
 0x3e4   : > { %1098 = vst [vmem:[%s1069_s19] sm:$0xff] %v1097_v34 }
 0x3e5 PF: > { %s1604_s22 = sshll.u32 %s1755_s12, 3  ;;  %s2229_s24 = scalar_lea.vmem [#allocation11], %s1910_s26 }
 0x3e6   : > { %s1103_s21 = sadd.s32 %s1751_s11, %s1604_s22  ;;  %v1121_v35 = vld [vmem:[%s2229_s24] sm:$0x3]  ;;  %s2230_s16 = scalar_lea.vmem [#allocation13], %s1910_s26 }
 0x3e7   : > { %v1156_v36 = vld [vmem:[%s2230_s16] sm:$0x3]  ;;  %s1605_s29 = sshll.u32 %s1103_s21, 1  ;;  %s2231_s25 = scalar_lea.vmem [#allocation15], %s1910_s26 }
 0x3e8   : > { %v1191_v37 = vld [vmem:[%s2231_s25] sm:$0x3]  ;;  %s2232_s17 = scalar_lea.vmem [#allocation17], %s1910_s26  ;;  %s1105_s14 = scalar_lea.vmem %s2203_s6, %s1605_s29 }
 0x3e9   : > { %v1226_v38 = vld [vmem:[%s2232_s17] sm:$0x3]  ;;  %s1140_s30 = scalar_lea.vmem %s2204_s7, %s1605_s29  ;;  %1122 = vst [vmem:[%s1105_s14] sm:$0x3] %v1121_v35  ;;  %s1175_s20 = scalar_lea.vmem %s2205_s8, %s1605_s29 }
 0x3ea   : > { %1157 = vst [vmem:[%s1140_s30] sm:$0x3] %v1156_v36  ;;  %s2233_s19 = sld [smem:[#allocation36_spill]]  ;;  %1192 = vst [vmem:[%s1175_s20] sm:$0x3] %v1191_v37 }
 0x3f0   : > { %s1210_s22 = scalar_lea.vmem %s2233_s19, %s1605_s29 }
 0x3f1   : > { %1227 = vst [vmem:[%s1210_s22] sm:$0x3] %v1226_v38 }
 0x3f2 PF: > { %s16_s15 = sadd.s32 1, %s1767_s15   ;;  %s2234_s30 = sld [smem:[#allocation31_spill]] }
 0x3f3   : > { %p13_p1 = scmp.ge.s32.totalorder %s16_s15, 130   ;;  %s2235_s10 = sld [smem:[#allocation35_spill]] }
 0x3f4   : > { %s2236_s12 = sld [smem:[#allocation32_spill]]  ;;  %s2237_s26 = sld [smem:[#allocation33_spill]] }
 0x3f5   : > { %s2238_s14 = sld [smem:[#allocation34_spill]]  ;;  %s2239_s11 = smov %s1759_s13 }
 0x3f6   :  { %15 = sbr.rel (!%p13_p1) target bundleno = 6 (0x6), region = 492 }
 0x3fa   : > { %s2240_s13 = smov %s2237_s26 }

// kernel: custom-call.7
= control target key start
LH: loop header
LB: loop body
LE: loop exit
PB: predicated region body
PF: predicated region fallthrough
CT: control target
= control target key end

     0   :  { %s1662_s30 = smov 0   ;;  %s1664_s10 = smov 0   ;;  %s1989_s0 = inlined_call_operand.vmem [shape: f32[8,5,5], index: 0, kind: input, shape index: {}]   ;;  %s1990_s1 = inlined_call_operand.vmem [shape: f32[8,5,5], index: 1, kind: input, shape index: {}]   ;;  %s1991_s2 = inlined_call_operand.vmem [shape: f32[8,5,5], index: 2, kind: input, shape index: {}]   ;;  %s1992_s3 = inlined_call_operand.vmem [shape: f32[8,5,5], index: 3, kind: input, shape index: {}]   ;;  %s1993_s4 = inlined_call_operand.vmem [shape: f32[8,5], index: 4, kind: output, shape index: {0}]   ;;  %s1994_s5 = inlined_call_operand.vmem [shape: f32[8,5], index: 5, kind: output, shape index: {1}]   ;;  %s1995_s6 = inlined_call_operand.vmem [shape: f32[8,5,5], index: 6, kind: output, shape index: {2}]   ;;  %s1996_s7 = inlined_call_operand.vmem [shape: f32[8,5,5], index: 7, kind: output, shape index: {3}]   ;;  %s1997_s8 = inlined_call_operand.vmem [shape: f32[8,5,5], index: 8, kind: output, shape index: {4}]   ;;  %s1998_s9 = inlined_call_operand.vmem [shape: f32[8,5,5], index: 9, kind: output, shape index: {5}]  }
   0x1   :  { %s1666_s11 = smov 0  }
   0x2 LB: > { %s1678_s12 = sadd.s32 4294967295, %s1599_s11   ;;  %s1681_s13 = sadd.s32 1, %s1599_s11   ;;  %s1599_s11 = sphi %s1666_s11, %s2007_s11   ;;  %s1595_s10 = sphi %s1664_s10, %s2006_s10   ;;  %s1591_s30 = sphi %s1662_s30, %s2005_s30  }
   0x3   : > { %s20_s14 = sshrl.u32 %s1599_s11, 3  ;;  %s21_s15 = sshrl.u32 %s1681_s13, 3 }
   0x4   : > { %s22_s16 = ssub.s32 %s20_s14, %s21_s15  ;;  %s25_s17 = sadd.s32 1, %s1595_s10 }
   0x5   : > { %p23_p0 = scmp.eq.s32.totalorder %s22_s16, 0  ;;  %p35_p1 = scmp.ne.s32.totalorder %s1595_s10, %s1591_s30 }
   0x6   : > { %p36_p2 = scmp.eq.s32.totalorder %s1678_s12, 7  ;;  %p1460_p4 = scmp.ge.s32.totalorder %s1599_s11, 8 }
   0x7   : > { %s1690_s18 = scalar_select %p23_p0, %s1595_s10, %s25_s17  }
   0x8   : > { %p1692_p3 = por %p36_p2, %p35_p1  ;;  %86 = sbr.rel (%p1460_p4) target bundleno = 17 (0x11), region = 16 }
   0x9   : > { %1999 = sst [smem:[#allocation23_spill]] %s1690_s18  ;;  %s88_s20 = sand.u32 (!%p1460_p4), 1, %s1599_s11  }
   0xa   : > { %s1462_s21 = sshll.u32 (!%p1460_p4), %s1599_s11, 3  ;;  %s1461_s22 = sshll.u32 (!%p1460_p4), %s88_s20, 3 }
   0xb   : > { %s92_s25 = scalar_lea.vmem (!%p1460_p4), %s1989_s0, %s1462_s21  ;;  %s90_s26 = scalar_lea.vmem (!%p1460_p4), [#allocation0], %s1461_s22 }
   0xc   : > { %v120_v0 = vld [vmem:[%s92_s25] sm:$0xff] (!%p1460_p4)  ;;  %s130_s29 = scalar_lea.vmem (!%p1460_p4), %s1990_s1, %s1462_s21  ;;  %s168_s16 = scalar_lea.vmem (!%p1460_p4), %s1991_s2, %s1462_s21 }
   0xd   : > { %121 = vst [vmem:[%s90_s26] sm:$0xff] (!%p1460_p4), %v120_v0  ;;  %v158_v1 = vld [vmem:[%s130_s29] sm:$0xff] (!%p1460_p4)  ;;  %s128_s17 = scalar_lea.vmem (!%p1460_p4), [#allocation1], %s1461_s22  ;;  %s206_s23 = scalar_lea.vmem (!%p1460_p4), %s1992_s3, %s1462_s21 }
   0xe   : > { %159 = vst [vmem:[%s128_s17] sm:$0xff] (!%p1460_p4), %v158_v1  ;;  %v196_v2 = vld [vmem:[%s168_s16] sm:$0xff] (!%p1460_p4)  ;;  %s166_s24 = scalar_lea.vmem (!%p1460_p4), [#allocation2], %s1461_s22  ;;  %s204_s25 = scalar_lea.vmem (!%p1460_p4), [#allocation3], %s1461_s22 }
   0xf   : > { %197 = vst [vmem:[%s166_s24] sm:$0xff] %v196_v2  ;;  %v234_v3 = vld [vmem:[%s206_s23] sm:$0xff] }
  0x10   : > { %235 = vst [vmem:[%s204_s25] sm:$0xff] %v234_v3 }
  0x11 PF: > { %p1469_p5 = scmp.ge.s32.totalorder %s1599_s11, 1  ;;  %p240_p6 = scmp.lt.s32.totalorder %s1599_s11, 9 }
  0x13   : > { %p241_p7 = pnand %p1469_p5, %p240_p6 }
  0x15   : > { %244 = sbr.rel (%p241_p7) target bundleno = 984 (0x3d8), region = 156 }
  0x1c   : > { %s247_s26 = sand.u32 1, %s1678_s12   ;;  %s281_s27 = sand.u32 1, %s1591_s30   ;;  %v325_v4 = vlaneseq  ;;  %v1609_v11 = vmov 0.0  }
  0x1d   : > { %s1470_s28 = sshll.u32 %s247_s26, 3  ;;  %s1715_s18 = sshll.u32 %s281_s27, 3 }
  0x1e   : > { %v1717_v5 = vand.u32 127, %v325_v4  ;;  %v1719_v6 = vshrl.u32 %v325_v4, 7  ;;  %s249_s21 = scalar_lea.vmem [#allocation0], %s1470_s28  ;;  %s253_s22 = scalar_lea.vmem [#allocation1], %s1470_s28 }
  0x1f   : > { %v309_v7 = vld [vmem:[%s249_s21] sm:$0xff]  ;;  %v312_v8 = vld [vmem:[%s253_s22] sm:$0xff]  ;;  %s257_s29 = scalar_lea.vmem [#allocation2], %s1470_s28  ;;  %s261_s11 = scalar_lea.vmem [#allocation3], %s1470_s28 }
  0x20   : > { %v315_v9 = vld [vmem:[%s257_s29] sm:$0xff]  ;;  %v318_v10 = vld [vmem:[%s261_s11] sm:$0xff]  ;;  %s1721_s14 = scalar_lea.vmem [#allocation6], %s1470_s28  ;;  %s1724_s30 = scalar_lea.vmem [#allocation7], %s1470_s28  ;;  %v327_v5 = vmov %v1717_v5  ;;  %v330_v6 = vmov %v1719_v6  ;;  %vm1349_vm2 = vcmp.lt.s32.totalorder %v1717_v5, 5 }
  0x21   : > { %320 = vst [vmem:[%s1721_s14] sm:$0xff] %v1609_v11  ;;  %321 = vst [vmem:[%s1724_s30] sm:$0xff] %v1609_v11  ;;  %s308_s15 = smov [#allocation10]  ;;  %s311_s16 = smov [#allocation11]  ;;  %v340_v5 = vmov %v1717_v5  ;;  %v343_v6 = vmov %v1719_v6  ;;  %vm334_vm0 = vcmp.eq.s32.totalorder %v330_v6, %v327_v5 }
  0x22   : > { %s1727_s17 = scalar_lea.vmem [#allocation8], %s1470_s28  ;;  %s1730_s20 = scalar_lea.vmem [#allocation9], %s1470_s28  ;;  %310 = vst [vmem:[%s308_s15] sm:$0xff] %v309_v7  ;;  %313 = vst [vmem:[%s311_s16] sm:$0xff] %v312_v8  ;;  %vm347_vm1 = vcmp.eq.s32.totalorder %v343_v6, %v340_v5  ;;  %v1341_v5 = vmov %v1717_v5  ;;  %v1344_v6 = vmov %v1719_v6 }
  0x23   : > { %322 = vst [vmem:[%s1727_s17] sm:$0xff] %v1609_v11  ;;  %323 = vst [vmem:[%s1730_s20] sm:$0xff] %v1609_v11  ;;  %s314_s23 = smov [#allocation12]  ;;  %s317_s24 = smov [#allocation13]  ;;  %vm1354_vm3 = vcmp.eq.s32.totalorder %v1344_v6, %v1341_v5  ;;  %v1392_v5 = vmov %v1717_v5  ;;  %v1361_v6 = vmov %v1719_v6 }
  0x24   : > { %316 = vst [vmem:[%s314_s23] sm:$0xff] %v315_v9  ;;  %319 = vst [vmem:[%s317_s24] sm:$0xff] %v318_v10  ;;  %s324_s14 = smov %s1721_s14  ;;  %s337_s20 = smov %s1730_s20  ;;  %v1358_v5 = vmov %v1717_v5  ;;  %v1395_v6 = vmov %v1719_v6 }
  0x25   : > { %s283_s25 = scalar_lea.vmem [#allocation4], %s1715_s18  ;;  %s1345_s27 = smov [#allocation10]  ;;  %v1375_v5 = vmov %v1717_v5  ;;  %v1378_v6 = vmov %v1719_v6  ;;  %vm1405_vm4 = vcmp.eq.s32.totalorder %v1395_v6, %v1392_v5 }
  0x26   : > { %s1362_s28 = smov [#allocation11]  ;;  %s1379_s21 = smov [#allocation12] }
  0x27   : > { %s1396_s22 = smov [#allocation13] }
  0x28   : > { %v331_v12 = vld [vmem:[%s324_s14] sm:$0x1f] }
  0x29   : > { %v335_v13 = vsel %vm334_vm0, 1.0, %v331_v12  ;;  %v1351_v16 = vld [vmem:[%s1345_s27] sm:$0x1f] }
  0x2a   : > { %v344_v14 = vld [vmem:[%s337_s20] sm:$0x1f]  ;;  %336 = vst [vmem:[%s324_s14] sm:$0x1f] %v335_v13  ;;  %v1352_v18 = vsel %vm1349_vm2, %v1351_v16, 0.0 }
  0x2b   : > { %v348_v15 = vsel %vm347_vm1, 1.0, %v344_v14  ;;  %v1368_v17 = vld [vmem:[%s1362_s28] sm:$0x1f]  ;;  %v1353_v22 = vmul.f32 %v1352_v18, %v1352_v18 }
  0x2c   : > { %349 = vst [vmem:[%s337_s20] sm:$0x1f] %v348_v15  ;;  %v1369_v19 = vsel %vm1349_vm2, %v1368_v17, 0.0  ;;  %v1385_v20 = vld [vmem:[%s1379_s21] sm:$0x1f] }
  0x2d   : > { %v1402_v21 = vld [vmem:[%s1396_s22] sm:$0x1f]  ;;  %v1370_v23 = vmul.f32 %v1369_v19, %v1369_v19  ;;  %v1386_v24 = vsel %vm1349_vm2, %v1385_v20, 0.0  ;;  %v1355_v29 = vsel %vm1354_vm3, 0.0, %v1353_v22 }
  0x2e   : > { %v1403_v25 = vsel %vm1349_vm2, %v1402_v21, 0.0  ;;  %v1387_v26 = vmul.f32 %v1386_v24, %v1386_v24 }
  0x2f   : > { %v1372_v27 = vadd.f32 %v1370_v23, %v1353_v22  ;;  %v1404_v28 = vmul.f32 %v1403_v25, %v1403_v25  ;;  %v1371_v30 = vadd.f32 %v1370_v23, %v1355_v29 }
  0x31   : > { %v1389_v31 = vadd.f32 %v1387_v26, %v1372_v27  ;;  %v1388_v32 = vadd.f32 %v1387_v26, %v1371_v30  ;;  %v1406_v33 = vsel %vm1405_vm4, 0.0, %v1404_v28 }
  0x33   : > { %v1408_v34 = vadd.f32 %v1404_v28, %v1389_v31  ;;  %v1407_v35 = vadd.f32 %v1406_v33, %v1388_v32 }
  0x35   : > { %1409 = vadd.xlane.f32.xlu0 %v1408_v34 }
  0x39   : > { %1417 = vadd.xlane.f32.xlu0 %v1407_v35 }
  0xc2   : > { %v1410_v36 = vpop.xlane.xlu0 %1409 }
  0xc3   : > { %v1411_v37 = vrot.slane %v1410_v36, 4 }
  0xc5   : > { %v1412_v38 = vadd.f32 %v1411_v37, %v1410_v36 }
  0xc6   : > { %v1418_v39 = vpop.xlane.xlu0 %1417 }
  0xc7   : > { %v1413_v40 = vrot.slane %v1412_v38, 2  ;;  %v1419_v41 = vrot.slane %v1418_v39, 4 }
  0xc9   : > { %v1420_v42 = vadd.f32 %v1419_v41, %v1418_v39  ;;  %v1414_v43 = vadd.f32 %v1413_v40, %v1412_v38 }
  0xcb   : > { %v1421_v44 = vrot.slane %v1420_v42, 2  ;;  %v1415_v46 = vrot.slane %v1414_v43, 1 }
  0xcd   : > { %v1422_v45 = vadd.f32 %v1421_v44, %v1420_v42  ;;  %v1416_v49 = vadd.f32 %v1415_v46, %v1414_v43 }
  0xcf   : > { %v1423_v47 = vrot.slane %v1422_v45, 1 }
  0xd1   : > { %v1424_v48 = vadd.f32 %v1423_v47, %v1422_v45 }
  0xd3   : > { %1510 = vpush %v1424_v48 }
  0xd4   : > { %1512 = vpush %v1416_v49 }
 0x104   : > { %s1511_s29 = spop %1510 }
 0x105   : > { %s1513_s11 = spop %1512 }
 0x106   : > { %s1427_s15 = smul.f32 1e-10, %s1513_s11 }
 0x108   : > { %p1428_p8 = scmp.le.f32.partialorder %s1511_s29, %s1427_s15 }
 0x109   : > { %s1759_s16 = smov (!%p1428_p8), 0  }
 0x10a   : > { %1431 = sbr.rel (%p1428_p8) target bundleno = 948 (0x3b4), region = 507 }
 0x111 LB: >> { %s1764_s23 = smov 0   ;;  %s1603_s16 = sphi %s1759_s16, %s2001_s16  }
 0x112 LB: >>> { %s454_s24 = smov [#allocation10]  ;;  %v458_v5 = vmov %v1717_v5  ;;  %v461_v6 = vmov %v1719_v6  ;;  %s474_s27 = smov [#allocation11]  ;;  %vm777_vm14 = vcmp.eq.s32.totalorder %v1719_v6, 0  ;;  %vm789_vm15 = vcmp.eq.s32.totalorder %v1719_v6, 4  ;;  %s1607_s23 = sphi %s1764_s23, %s453_s23  }
 0x113   : >>> { %v478_v5 = vmov %v1717_v5  ;;  %v481_v6 = vmov %v1719_v6  ;;  %v462_v50 = vld [vmem:[%s454_s24] sm:$0x1f]  ;;  %vm465_vm5 = vcmp.eq.s32.totalorder %v461_v6, %v458_v5  ;;  %s494_s28 = smov [#allocation13]  ;;  %s455_s21 = smov [#allocation14] }
 0x114   : >>> { %vm485_vm6 = vcmp.eq.s32.totalorder %v481_v6, %v478_v5  ;;  %v498_v5 = vmov %v1717_v5  ;;  %v501_v6 = vmov %v1719_v6  ;;  %v466_v51 = vsel %vm465_vm5, %v462_v50, 0.0  ;;  %v482_v52 = vld [vmem:[%s474_s27] sm:$0x1f]  ;;  %s475_s22 = smov [#allocation15]  ;;  %s495_s29 = smov [#allocation16] }
 0x115   : >>> { %vm505_vm7 = vcmp.eq.s32.totalorder %v501_v6, %v498_v5  ;;  %v467_v53 = vrot.slane %v466_v51, 4  ;;  %v486_v54 = vsel %vm485_vm6, %v482_v52, 0.0  ;;  %v502_v55 = vld [vmem:[%s494_s28] sm:$0x1f]  ;;  %s518_s11 = smov [#allocation15]  ;;  %s516_s15 = smov [#allocation14]  ;;  %v567_v5 = vmov %v1717_v5 }
 0x116   : >>> { %v487_v56 = vrot.slane %v486_v54, 4  ;;  %v506_v57 = vsel %vm505_vm7, %v502_v55, 0.0  ;;  %s520_s24 = smov [#allocation16]  ;;  %s555_s27 = smov [#allocation17]  ;;  %v570_v6 = vmov %v1719_v6  ;;  %v582_v5 = vmov %v1717_v5 }
 0x117   : >>> { %v468_v58 = vadd.f32 %v467_v53, %v466_v51  ;;  %v507_v59 = vrot.slane %v506_v57, 4  ;;  %s557_s28 = smov [#allocation18]  ;;  %v585_v6 = vmov %v1719_v6  ;;  %vm572_vm12 = vcmp.eq.s32.totalorder %v570_v6, %v567_v5  ;;  %s1788_s14 = smov %s1721_s14 }
 0x118   : >>> { %v488_v60 = vadd.f32 %v487_v56, %v486_v54  ;;  %vm587_vm13 = vcmp.eq.s32.totalorder %v585_v6, %v582_v5  ;;  %s1791_s30 = smov %s1724_s30  ;;  %s1794_s17 = smov %s1727_s17  ;;  %v825_v53 = vld [vmem:[%s1788_s14] sm:$0x1f]  ;;  %v680_v5 = vmov %v1717_v5  ;;  %v683_v6 = vmov %v1719_v6 }
 0x119   : >>> { %v469_v61 = vrot.slane %v468_v58, 2  ;;  %v508_v62 = vadd.f32 %v507_v59, %v506_v57  ;;  %s1799_s20 = smov %s1730_s20  ;;  %v826_v54 = vld [vmem:[%s1791_s30] sm:$0x1f]  ;;  %s819_s26 = smov [#allocation22]  ;;  %v694_v5 = vmov %v1717_v5  ;;  %v697_v6 = vmov %v1719_v6 }
 0x11a   : >>> { %v489_v63 = vrot.slane %v488_v60, 2  ;;  %v827_v55 = vld [vmem:[%s1794_s17] sm:$0x1f]  ;;  %vm687_vm0 = vcmp.eq.s32.totalorder %v683_v6, %v680_v5  ;;  %v653_v5 = vmov %v1717_v5  ;;  %v656_v6 = vmov %v1719_v6  ;;  %s453_s23 = sadd.s32 1, %s1607_s23  }
 0x11b   : >>> { %v470_v0 = vadd.f32 %v469_v61, %v468_v58  ;;  %v509_v1 = vrot.slane %v508_v62, 2  ;;  %v828_v57 = vld [vmem:[%s1799_s20] sm:$0x1f]  ;;  %v667_v5 = vmov %v1717_v5  ;;  %v670_v6 = vmov %v1719_v6  ;;  %p450_p9 = scmp.ge.s32.totalorder %s453_s23, 9  }
 0x11c   : >>> { %v490_v2 = vadd.f32 %v489_v63, %v488_v60  ;;  %vm702_vm1 = vcmp.eq.s32.totalorder %v697_v6, %v694_v5  ;;  %vm661_vm3 = vcmp.eq.s32.totalorder %v656_v6, %v653_v5  ;;  %vm674_vm4 = vcmp.eq.s32.totalorder %v670_v6, %v667_v5 }
 0x11d   : >>> { %v471_v3 = vrot.slane %v470_v0, 1  ;;  %v510_v4 = vadd.f32 %v509_v1, %v508_v62  ;;  %vm716_vm5 = vcmp.eq.s32.totalorder %v1717_v5, 0  ;;  %vm720_vm6 = vcmp.eq.s32.totalorder %v1717_v5, 1 }
 0x11e   : >>> { %v491_v7 = vrot.slane %v490_v2, 1  ;;  %vm733_vm7 = vcmp.eq.s32.totalorder %v1717_v5, 4  ;;  %v354_v5 = vmov (%p450_p9), %v1717_v5  ;;  %v357_v6 = vmov (%p450_p9), %v1719_v6 }
 0x11f   : >>> { %v472_v8 = vadd.f32 %v471_v3, %v470_v0  ;;  %v511_v9 = vrot.slane %v510_v4, 1  ;;  %v407_v5 = vmov (%p450_p9), %v1717_v5 }
 0x120   : >>> { %v492_v10 = vadd.f32 %v491_v7, %v490_v2 }
 0x121   : >>> { %473 = vst [vmem:[%s455_s21] sm:$0x1] %v472_v8  ;;  %v512_v11 = vadd.f32 %v511_v9, %v510_v4  ;;  %s514_s21 = smov [#allocation19] }
 0x122   : >>> { %493 = vst [vmem:[%s475_s22] sm:$0x1] %v492_v10  ;;  %s515_s22 = smov [#allocation20]  ;;  %s559_s21 = smov %s514_s21 }
 0x123   : >>> { %513 = vst [vmem:[%s495_s29] sm:$0x1] %v512_v11  ;;  %s561_s22 = smov %s515_s22  ;;  %s563_s29 = smov [#allocation19] }
 0x128   : >>> { %v517_v14 = vld [vmem:[%s516_s15] sm:$0xff]  ;;  %s576_s15 = smov [#allocation21] }
 0x129   : >>> { %v519_v12 = vld [vmem:[%s518_s11] sm:$0xff]  ;;  %v540_v27 = vand.u32 2147483647, %v517_v14  ;;  %s578_s11 = smov [#allocation20] }
 0x12a   : >>> { %v523_v13 = vmul.f32 2.0, %v519_v12  ;;  %v521_v15 = vld [vmem:[%s520_s24] sm:$0xff]  ;;  %v541_v32 = vand.u32 2147483647, %v519_v12  ;;  %s593_s24 = smov [#allocation21] }
 0x12b   : >>> { %v522_v16 = vsub.f32 %v521_v15, %v517_v14  ;;  %v542_v28 = vand.u32 2147483647, %v521_v15 }
 0x12c   : >>> { %1561 = vrcp.f32 %v523_v13 }
 0x12d   : >>> { %v543_v31 = vmin.f32 %v540_v27, %v542_v28 }
 0x12f   : >>> { %v544_v33 = vmul.f32 1.1920929e-08, %v543_v31 }
 0x131   : >>> { %vm545_vm11 = vcmp.le.f32.partialorder %v541_v32, %v544_v33 }
 0x136   : >>> { %v1562_v17 = vpop.eup %1561 }
 0x137   : >>> { %v525_v18 = vmul.f32 %v1562_v17, %v522_v16 }
 0x139   : >>> { %v527_v19 = vmul.f32 %v525_v18, %v525_v18  ;;  %vm526_vm10 = vcmp.ge.f32.partialorder %v525_v18, 0.0 }
 0x13b   : >>> { %v528_v20 = vadd.f32 1.0, %v527_v19 }
 0x13d   : >>> { %1563 = vrsqrt.f32 %v528_v20  ;;  %vm531_vm8 = vcmp.eq.f32.partialorder %v528_v20, inf  ;;  %v534_v22 = vand.u32 2147483648, %v528_v20  ;;  %vm533_vm9 = vcmp.eq.f32.partialorder %v528_v20, 0.0 }
 0x147   : >>> { %v1564_v21 = vpop.eup %1563 }
 0x148   : >>> { %v530_v23 = vmul.f32 %v1564_v21, %v528_v20 }
 0x14a   : >>> { %v532_v24 = vsel %vm531_vm8, %v528_v20, %v530_v23  ;;  %vm369_vm8 = vcmp.eq.s32.totalorder (%p450_p9), %v357_v6, %v354_v5  ;;  %v410_v6 = vmov (%p450_p9), %v1719_v6  ;;  %v373_v5 = vmov (%p450_p9), %v1717_v5 }
 0x14b   : >>> { %v535_v25 = vsel %vm533_vm9, %v534_v22, %v532_v24  ;;  %v376_v6 = vmov (%p450_p9), %v1719_v6  ;;  %v390_v5 = vmov (%p450_p9), %v1717_v5  ;;  %vm422_vm9 = vcmp.eq.s32.totalorder (%p450_p9), %v410_v6, %v407_v5 }
 0x14c   : >>> { %v536_v26 = vxor.u32 2147483648, %v535_v25  ;;  %v393_v6 = vmov (%p450_p9), %v1719_v6 }
 0x14e   : >>> { %v537_v29 = vsel %vm526_vm10, %v535_v25, %v536_v26 }
 0x14f   : >>> { %v538_v30 = vadd.f32 %v537_v29, %v525_v18 }
 0x151   : >>> { %1565 = vrcp.f32 %v538_v30 }
 0x15b   : >>> { %v1566_v34 = vpop.eup %1565 }
 0x15c   : >>> { %v546_v35 = vsel %vm545_vm11, 0.0, %v1566_v34 }
 0x15d   : >>> { %v547_v36 = vmul.f32 %v546_v35, %v546_v35  ;;  %v551_v37 = vmul.f32 %v546_v35, %v519_v12 }
 0x15f   : >>> { %v548_v38 = vadd.f32 1.0, %v547_v36  ;;  %v552_v39 = vsub.f32 %v517_v14, %v551_v37  ;;  %v554_v40 = vadd.f32 %v551_v37, %v521_v15 }
 0x161   : >>> { %1567 = vrsqrt.f32 %v548_v38  ;;  %556 = vst [vmem:[%s555_s27] sm:$0xff] %v552_v39  ;;  %558 = vst [vmem:[%s557_s28] sm:$0xff] %v554_v40  ;;  %s1779_s27 = smov [#allocation10]  ;;  %s591_s28 = smov [#allocation22] }
 0x162   : >>> { %v601_v49 = vld [vmem:[%s1779_s27] sm:$0x1f] }
 0x16b   : >>> { %v1568_v41 = vpop.eup %1567 }
 0x16c   : >>> { %560 = vst [vmem:[%s559_s21] sm:$0xff] %v1568_v41  ;;  %v550_v42 = vmul.f32 %v1568_v41, %v546_v35  ;;  %s1781_s21 = smov [#allocation11] }
 0x16d   : >>> { %v602_v50 = vld [vmem:[%s1781_s21] sm:$0x1f] }
 0x16e   : >>> { %562 = vst [vmem:[%s561_s22] sm:$0xff] %v550_v42  ;;  %s1783_s22 = smov [#allocation12] }
 0x16f   : >>> { %v603_v51 = vld [vmem:[%s1783_s22] sm:$0x1f] }
 0x173   : >>> { %v564_v43 = vld [vmem:[%s563_s29] ss:$0 sm:$0xff]  ;;  %s1785_s29 = smov [#allocation13] }
 0x174   : >>> { %v573_v44 = vsel %vm572_vm12, %v564_v43, 0.0  ;;  %v604_v52 = vld [vmem:[%s1785_s29] sm:$0x1f] }
 0x175   : >>> { %574 = vadd.xlane.f32.xlu0 %v573_v44  ;;  %v579_v45 = vld [vmem:[%s578_s11] ss:$0 sm:$0xff]  ;;  %s817_s11 = smov [#allocation21] }
 0x176   : >>> { %v588_v46 = vsel %vm587_vm13, %v579_v45, 0.0 }
 0x179   : >>> { %589 = vadd.xlane.f32.xlu0 %v588_v46 }
 0x202   : >>> { %v575_v47 = vpop.xlane.xlu0 %574 }
 0x203   : >>> { %577 = vst [vmem:[%s576_s15] sm:$0xff] %v575_v47  ;;  %s595_s15 = smov [#allocation22] }
 0x206   : >>> { %v590_v48 = vpop.xlane.xlu0 %589 }
 0x207   : >>> { %592 = vst [vmem:[%s591_s28] sm:$0xff] %v590_v48  ;;  %s1815_s28 = smov [#allocation12] }
 0x20a   : >>> { %v594_v56 = vld [vmem:[%s593_s24] sm:$0xff]  ;;  %s623_s24 = smov [#allocation20] }
 0x20b   : >>> { %v818_v58 = vld [vmem:[%s817_s11] sm:$0xff]  ;;  %v605_v59 = vmul.f32 %v601_v49, %v594_v56  ;;  %v608_v60 = vmul.f32 %v602_v50, %v594_v56  ;;  %v612_v61 = vmul.f32 %v603_v51, %v594_v56  ;;  %v615_v62 = vmul.f32 %v604_v52, %v594_v56  ;;  %s1817_s11 = smov [#allocation13] }
 0x20c   : >>> { %v829_v63 = vmul.f32 %v825_v53, %v818_v58  ;;  %v832_v0 = vmul.f32 %v826_v54, %v818_v58  ;;  %v836_v1 = vmul.f32 %v827_v55, %v818_v58  ;;  %v839_v2 = vmul.f32 %v828_v57, %v818_v58  ;;  %v624_v24 = vld [vmem:[%s623_s24] ss:$0 sm:$0xff]  ;;  %s649_s24 = smov [#allocation10] }
 0x20e   : >>> { %v596_v3 = vld [vmem:[%s595_s15] sm:$0xff]  ;;  %s1819_s15 = smov [#allocation10] }
 0x20f   : >>> { %v820_v4 = vld [vmem:[%s819_s26] sm:$0xff]  ;;  %v606_v7 = vmul.f32 %v603_v51, %v596_v3  ;;  %v609_v8 = vmul.f32 %v604_v52, %v596_v3  ;;  %v611_v9 = vmul.f32 %v601_v49, %v596_v3  ;;  %v614_v10 = vmul.f32 %v602_v50, %v596_v3  ;;  %s621_s26 = smov [#allocation19] }
 0x210   : >>> { %v830_v11 = vmul.f32 %v827_v55, %v820_v4  ;;  %v833_v12 = vmul.f32 %v828_v57, %v820_v4  ;;  %v835_v13 = vmul.f32 %v825_v53, %v820_v4  ;;  %v838_v14 = vmul.f32 %v826_v54, %v820_v4  ;;  %v622_v23 = vld [vmem:[%s621_s26] ss:$0 sm:$0xff]  ;;  %s650_s26 = smov [#allocation17] }
 0x211   : >>> { %v607_v15 = vsub.f32 %v605_v59, %v606_v7  ;;  %v610_v16 = vsub.f32 %v608_v60, %v609_v8  ;;  %v613_v17 = vadd.f32 %v612_v61, %v611_v9  ;;  %v616_v18 = vadd.f32 %v615_v62, %v614_v10  ;;  %v657_v59 = vld [vmem:[%s650_s26] ss:$0 sm:$0xff]  ;;  %s769_s26 = smov [#allocation10] }
 0x212   : >>> { %v831_v19 = vsub.f32 %v829_v63, %v830_v11  ;;  %v834_v20 = vsub.f32 %v832_v0, %v833_v12  ;;  %v837_v21 = vadd.f32 %v836_v1, %v835_v13  ;;  %v840_v22 = vadd.f32 %v839_v2, %v838_v14 }
 0x213   : >>> { %618 = vst [vmem:[%s1781_s21] sm:$0x1f] %v610_v16  ;;  %620 = vst [vmem:[%s1785_s29] sm:$0x1f] %v616_v18  ;;  %s691_s21 = smov [#allocation18]  ;;  %s690_s29 = smov [#allocation13] }
 0x214   : >>> { %617 = vst [vmem:[%s1779_s27] sm:$0x1f] %v607_v15  ;;  %619 = vst [vmem:[%s1783_s22] sm:$0x1f] %v613_v17  ;;  %s1832_s27 = smov [#allocation11]  ;;  %s677_s22 = smov [#allocation12]  ;;  %v698_v55 = vld [vmem:[%s691_s21] ss:$0 sm:$0xff] }
 0x215   : >>> { %841 = vst [vmem:[%s1788_s14] sm:$0x1f] %v831_v19  ;;  %842 = vst [vmem:[%s1791_s30] sm:$0x1f] %v834_v20  ;;  %s1822_s14 = smov %s1721_s14  ;;  %s1830_s30 = smov %s1724_s30 }
 0x216   : >>> { %843 = vst [vmem:[%s1794_s17] sm:$0x1f] %v837_v21  ;;  %844 = vst [vmem:[%s1799_s20] sm:$0x1f] %v840_v22  ;;  %s1825_s17 = smov %s1727_s17  ;;  %s1835_s20 = smov %s1730_s20 }
 0x217   : >>> { %s706_s21 = smov [#allocation11] }
 0x21a   : >>> { %v632_v26 = vld [vmem:[%s1817_s11] sm:$0x1f] }
 0x21b   : >>> { %v631_v25 = vld [vmem:[%s1815_s28] sm:$0x1f]  ;;  %v640_v32 = vmul.f32 %v632_v26, %v624_v24  ;;  %v643_v38 = vmul.f32 %v632_v26, %v622_v23 }
 0x21c   : >>> { %v629_v27 = vld [vmem:[%s1819_s15] sm:$0x1f]  ;;  %v639_v31 = vmul.f32 %v631_v25, %v622_v23  ;;  %v642_v33 = vmul.f32 %v631_v25, %v624_v24 }
 0x21d   : >>> { %v847_v28 = vld [vmem:[%s1822_s14] ss:$0 sm:$0xff]  ;;  %v1489_v30 = vld [vmem:[%s1822_s14 + $0x4] ss:$0 sm:$0xff]  ;;  %v633_v44 = vmul.f32 %v629_v27, %v622_v23  ;;  %v636_v45 = vmul.f32 %v629_v27, %v624_v24 }
 0x21e   : >>> { %v1488_v29 = vld [vmem:[%s1822_s14 - $0x1] sm:$0x1e]  ;;  %v1493_v41 = vld [vmem:[%s1830_s30 + $0x4] ss:$0 sm:$0xff]  ;;  %v641_v43 = vsub.f32 %v639_v31, %v640_v32  ;;  %v644_v49 = vadd.f32 %v643_v38, %v642_v33 }
 0x21f   : >>> { %v854_v34 = vsel %vm777_vm14, %v847_v28, %v1488_v29  ;;  %v858_v35 = vld [vmem:[%s1825_s17] ss:$0 sm:$0xff]  ;;  %v1491_v36 = vld [vmem:[%s1825_s17 + $0x1] sm:$0xf] }
 0x220   : >>> { %v871_v37 = vld [vmem:[%s1830_s30] ss:$0 sm:$0xff]  ;;  %857 = vst [vmem:[%s1822_s14] sm:$0x1f] %v854_v34  ;;  %v866_v39 = vsel %vm789_vm15, %v1489_v30, %v1491_v36  ;;  %v1495_v47 = vld [vmem:[%s1835_s20 + $0x1] sm:$0xf]  ;;  %647 = vst [vmem:[%s1815_s28] sm:$0x1f] %v641_v43 }
 0x221   : >>> { %v1492_v40 = vld [vmem:[%s1830_s30 - $0x1] sm:$0x1e]  ;;  %1490 = vst [vmem:[%s1822_s14 + $0x1] sm:$0x1] %v858_v35  ;;  %868 = vst [vmem:[%s1825_s17] sm:$0x1f] %v866_v39  ;;  %v890_v50 = vsel %vm789_vm15, %v1493_v41, %v1495_v47  ;;  %s664_s28 = smov [#allocation11] }
 0x222   : >>> { %v882_v42 = vld [vmem:[%s1835_s20] ss:$0 sm:$0xff]  ;;  %v878_v46 = vsel %vm777_vm14, %v871_v37, %v1492_v40  ;;  %648 = vst [vmem:[%s1817_s11] sm:$0x1f] %v644_v49  ;;  %s1877_s11 = smov [#allocation12] }
 0x223   : >>> { %v630_v48 = vld [vmem:[%s1832_s27] sm:$0x1f]  ;;  %881 = vst [vmem:[%s1830_s30] sm:$0x1f] %v878_v46  ;;  %892 = vst [vmem:[%s1835_s20] sm:$0x1f] %v890_v50 }
 0x224   : >>> { %v634_v51 = vmul.f32 %v630_v48, %v624_v24  ;;  %v637_v52 = vmul.f32 %v630_v48, %v622_v23  ;;  %1494 = vst [vmem:[%s1830_s30 + $0x1] sm:$0x1] %v882_v42 }
 0x226   : >>> { %v635_v53 = vsub.f32 %v633_v44, %v634_v51  ;;  %v638_v54 = vadd.f32 %v637_v52, %v636_v45 }
 0x227   : >>> { %v684_v56 = vld [vmem:[%s677_s22] sm:$0x1f] }
 0x228   : >>> { %645 = vst [vmem:[%s1819_s15] sm:$0x1f] %v635_v53  ;;  %646 = vst [vmem:[%s1832_s27] sm:$0x1f] %v638_v54  ;;  %v688_v57 = vsel %vm687_vm0, 0.0, %v684_v56  ;;  %s1610_s15 = smov 1   ;;  %s705_s27 = smov [#allocation10] }
 0x229   : >>> { %v699_v58 = vld [vmem:[%s690_s29] sm:$0x1f]  ;;  %689 = vst [vmem:[%s677_s22] sm:$0x1f] %v688_v57  ;;  %s1611_s22 = smov 127  }
 0x22a   : >>> { %v703_v60 = vsel %vm702_vm1, %v698_v55, %v699_v58 }
 0x22b   : >>> { %704 = vst [vmem:[%s690_s29] sm:$0x1f] %v703_v60  ;;  %s1880_s29 = smov [#allocation13] }
 0x22f   : >>> { %v658_v61 = vld [vmem:[%s649_s24] sm:$0x1f] }
 0x230   : >>> { %v671_v62 = vld [vmem:[%s664_s28] sm:$0x1f]  ;;  %v662_v63 = vsel %vm661_vm3, %v657_v59, %v658_v61 }
 0x231   : >>> { %v675_v0 = vsel %vm674_vm4, 0.0, %v671_v62  ;;  %663 = vst [vmem:[%s649_s24] sm:$0x1f] %v662_v63  ;;  %v743_v1 = vld [vmem:[%s1877_s11] sm:$0x1f]  ;;  %s793_s24 = smov [#allocation11] }
 0x232   : >>> { %676 = vst [vmem:[%s664_s28] sm:$0x1f] %v675_v0  ;;  %744 = vrot.lane.b32.xlu0 %v743_v1, %s1610_s15  ;;  %v739_v7 = vld [vmem:[%s1880_s29] sm:$0x1f]  ;;  %s770_s28 = smov [#allocation12] }
 0x233   : >>> { %v760_v8 = vld [vmem:[%s1880_s29] sm:$0x1f] }
 0x234   : >>> { %v742_v26 = vld [vmem:[%s1877_s11] sm:$0x1f] }
 0x238   : >>> { %v711_v2 = vld [vmem:[%s705_s27] sm:$0x1f] }
 0x239   : >>> { %712 = vrot.lane.b32.xlu1 %v711_v2, %s1610_s15  ;;  %v707_v3 = vld [vmem:[%s706_s21] sm:$0x1f] }
 0x23a   : >>> { %v728_v4 = vld [vmem:[%s706_s21] sm:$0x1f] }
 0x23b   : >>> { %v710_v14 = vld [vmem:[%s705_s27] sm:$0x1f] }
 0x23d   : >>> { %708 = vrot.lane.b32.xlu1 %v707_v3, %s1610_s15 }
 0x241   : >>> { %729 = vrot.lane.b32.xlu1 %v728_v4, %s1611_s22 }
 0x245   : >>> { %740 = vrot.lane.b32.xlu1 %v739_v7, %s1610_s15  ;;  %s794_s15 = smov [#allocation13] }
 0x249   : >>> { %761 = vrot.lane.b32.xlu1 %v760_v8, %s1611_s22  ;;  %s394_s22 = smov (%p450_p9), [#allocation12] }
 0x2a4   : >>> { %v745_v16 = vpop.permute.xlu0 %744 }
 0x2a5   : >>> { %v749_v18 = vsel %vm716_vm5, %v743_v1, %v745_v16 }
 0x2ab   : >>> { %v713_v9 = vpop.permute.xlu1 %712 }
 0x2ac   : >>> { %v717_v10 = vsel %vm716_vm5, %v711_v2, %v713_v9 }
 0x2af   : >>> { %v709_v11 = vpop.permute.xlu1 %708 }
 0x2b0   : >>> { %v721_v12 = vsel %vm720_vm6, %v709_v11, %v717_v10 }
 0x2b1   : >>> { %v727_v13 = vsel %vm1349_vm2, %v721_v12, 0.0 }
 0x2b2   : >>> { %735 = vst [vmem:[%s705_s27] sm:$0x1f] %v727_v13  ;;  %s358_s27 = smov (%p450_p9), [#allocation10] }
 0x2b3   : >>> { %v730_v15 = vpop.permute.xlu1 %729 }
 0x2b4   : >>> { %v734_v17 = vsel %vm733_vm7, %v710_v14, %v730_v15 }
 0x2b5   : >>> { %736 = vst [vmem:[%s706_s21] sm:$0x1f] %v734_v17  ;;  %s377_s21 = smov (%p450_p9), [#allocation11] }
 0x2b7   : >>> { %v741_v19 = vpop.permute.xlu1 %740 }
 0x2b8   : >>> { %v753_v20 = vsel %vm720_vm6, %v741_v19, %v749_v18 }
 0x2b9   : >>> { %v771_v21 = vld [vmem:[%s769_s26] ss:$0 sm:$0xff]  ;;  %v1481_v23 = vld [vmem:[%s769_s26 + $0x4] ss:$0 sm:$0xff]  ;;  %v759_v25 = vsel %vm1349_vm2, %v753_v20, 0.0 }
 0x2ba   : >>> { %v1480_v22 = vld [vmem:[%s769_s26 - $0x1] sm:$0x1e]  ;;  %767 = vst [vmem:[%s1877_s11] sm:$0x1f] %v759_v25  ;;  %s893_s11 = sadd.s32 (%p450_p9), 1, %s1603_s16  }
 0x2bb   : >>> { %v778_v24 = vsel %vm777_vm14, %v771_v21, %v1480_v22  ;;  %v762_v27 = vpop.permute.xlu1 %761  ;;  %p446_p10 = scmp.ge.s32.totalorder (%p450_p9), %s893_s11, 15  ;;  %s2001_s16 = smov (%p450_p9), %s893_s11 }
 0x2bc   : >>> { %781 = vst [vmem:[%s769_s26] sm:$0x1f] %v778_v24  ;;  %v795_v28 = vld [vmem:[%s793_s24] ss:$0 sm:$0xff]  ;;  %v1485_v30 = vld [vmem:[%s793_s24 + $0x4] ss:$0 sm:$0xff]  ;;  %v766_v31 = vsel %vm733_vm7, %v742_v26, %v762_v27 }
 0x2bd   : >>> { %v1484_v29 = vld [vmem:[%s793_s24 - $0x1] sm:$0x1e]  ;;  %768 = vst [vmem:[%s1880_s29] sm:$0x1f] %v766_v31  ;;  %s411_s29 = smov (%p450_p9), [#allocation13] }
 0x2be   : >>> { %v802_v32 = vsel %vm777_vm14, %v795_v28, %v1484_v29 }
 0x2bf   : >>> { %805 = vst [vmem:[%s793_s24] sm:$0x1f] %v802_v32 }
 0x2c1   : >>> { %v782_v33 = vld [vmem:[%s770_s28] ss:$0 sm:$0xff]  ;;  %v1483_v34 = vld [vmem:[%s770_s28 + $0x1] sm:$0xf] }
 0x2c2   : >>> { %1482 = vst [vmem:[%s769_s26 + $0x1] sm:$0x1] %v782_v33  ;;  %v790_v35 = vsel %vm789_vm15, %v1481_v23, %v1483_v34  ;;  %452 = sbr.rel (!%p450_p9) target bundleno = 274 (0x112), region = 502 }
 0x2c3   : >>> { %792 = vst [vmem:[%s770_s28] sm:$0x1f] %v790_v35 }
 0x2c4   : >>> { %v806_v36 = vld [vmem:[%s794_s15] ss:$0 sm:$0xff]  ;;  %v1487_v37 = vld [vmem:[%s794_s15 + $0x1] sm:$0xf] }
 0x2c5   : >>> { %1486 = vst [vmem:[%s793_s24 + $0x1] sm:$0x1] %v806_v36  ;;  %v814_v38 = vsel %vm789_vm15, %v1485_v30, %v1487_v37 }
 0x2c6   : >>> { %816 = vst [vmem:[%s794_s15] sm:$0x1f] %v814_v38 }
 0x2c9   : >> { %v364_v39 = vld [vmem:[%s358_s27] sm:$0x1f] }
 0x2ca   : >> { %v365_v41 = vsel %vm1349_vm2, %v364_v39, 0.0  ;;  %v400_v43 = vld [vmem:[%s394_s22] sm:$0x1f] }
 0x2cb   : >> { %v366_v45 = vmul.f32 %v365_v41, %v365_v41  ;;  %v401_v47 = vsel %vm1349_vm2, %v400_v43, 0.0 }
 0x2cc   : >> { %v383_v40 = vld [vmem:[%s377_s21] sm:$0x1f]  ;;  %v402_v49 = vmul.f32 %v401_v47, %v401_v47 }
 0x2cd   : >> { %v384_v42 = vsel %vm1349_vm2, %v383_v40, 0.0  ;;  %v417_v44 = vld [vmem:[%s411_s29] sm:$0x1f]  ;;  %v370_v52 = vsel %vm369_vm8, 0.0, %v366_v45 }
 0x2ce   : >> { %v385_v46 = vmul.f32 %v384_v42, %v384_v42  ;;  %v418_v48 = vsel %vm1349_vm2, %v417_v44, 0.0 }
 0x2cf   : >> { %v419_v51 = vmul.f32 %v418_v48, %v418_v48 }
 0x2d0   : >> { %v387_v50 = vadd.f32 %v385_v46, %v366_v45  ;;  %v386_v53 = vadd.f32 %v385_v46, %v370_v52 }
 0x2d1   : >> { %v423_v56 = vsel %vm422_vm9, 0.0, %v419_v51 }
 0x2d2   : >> { %v404_v54 = vadd.f32 %v402_v49, %v387_v50  ;;  %v403_v55 = vadd.f32 %v402_v49, %v386_v53 }
 0x2d4   : >> { %v425_v57 = vadd.f32 %v419_v51, %v404_v54  ;;  %v424_v58 = vadd.f32 %v423_v56, %v403_v55 }
 0x2d6   : >> { %426 = vadd.xlane.f32.xlu0 %v425_v57 }
 0x2da   : >> { %434 = vadd.xlane.f32.xlu0 %v424_v58 }
 0x363   : >> { %v427_v59 = vpop.xlane.xlu0 %426 }
 0x364   : >> { %v428_v60 = vrot.slane %v427_v59, 4 }
 0x366   : >> { %v429_v61 = vadd.f32 %v428_v60, %v427_v59 }
 0x367   : >> { %v435_v62 = vpop.xlane.xlu0 %434 }
 0x368   : >> { %v430_v63 = vrot.slane %v429_v61, 2  ;;  %v436_v0 = vrot.slane %v435_v62, 4 }
 0x36a   : >> { %v437_v1 = vadd.f32 %v436_v0, %v435_v62  ;;  %v431_v2 = vadd.f32 %v430_v63, %v429_v61 }
 0x36c   : >> { %v438_v3 = vrot.slane %v437_v1, 2  ;;  %v432_v7 = vrot.slane %v431_v2, 1 }
 0x36e   : >> { %v439_v4 = vadd.f32 %v438_v3, %v437_v1  ;;  %v433_v10 = vadd.f32 %v432_v7, %v431_v2 }
 0x370   : >> { %v440_v8 = vrot.slane %v439_v4, 1 }
 0x372   : >> { %v441_v9 = vadd.f32 %v440_v8, %v439_v4 }
 0x374   : >> { %1514 = vpush %v441_v9 }
 0x375   : >> { %1516 = vpush %v433_v10 }
 0x3a5   : >> { %s1515_s23 = spop %1514 }
 0x3a6   : >> { %s1517_s26 = spop %1516 }
 0x3a7   : >> { %s444_s24 = smul.f32 1e-10, %s1517_s26 }
 0x3a9   : >> { %p445_p11 = scmp.le.f32.partialorder %s1515_s23, %s444_s24 }
 0x3ab   : >> { %p447_p12 = por %p446_p10, %p445_p11 }
 0x3ad   : > { %895 = sbr.rel (!%p447_p12) target bundleno = 273 (0x111), region = 513 }
 0x3b4 PF: > { %s900_s28 = smov [#allocation10]  ;;  %v904_v5 = vmov %v1717_v5  ;;  %v907_v6 = vmov %v1719_v6  ;;  %s920_s16 = smov [#allocation13] }
 0x3b5   : > { %v924_v5 = vmov %v1717_v5  ;;  %v927_v6 = vmov %v1719_v6  ;;  %v908_v11 = vld [vmem:[%s900_s28] sm:$0x1f]  ;;  %vm911_vm10 = vcmp.eq.s32.totalorder %v907_v6, %v904_v5  ;;  %s896_s15 = sand.u32 7, %s1678_s12   ;;  %s2002_s27 = scalar_lea.vmem [#allocation5], %s1715_s18 }
 0x3b6   : > { %vm931_vm11 = vcmp.eq.s32.totalorder %v927_v6, %v924_v5  ;;  %v912_v12 = vsel %vm911_vm10, %v908_v11, 0.0  ;;  %v928_v14 = vld [vmem:[%s920_s16] sm:$0x1f]  ;;  %s897_s11 = scalar_lea.vmem %s283_s25, %s896_s15 [#allocation4]  ;;  %s899_s21 = scalar_lea.vmem %s2002_s27, %s896_s15 [#allocation5] }
 0x3b7   : > { %v913_v13 = vrot.slane %v912_v12, 4  ;;  %v932_v15 = vsel %vm931_vm11, %v928_v14, 0.0  ;;  %s901_s11 = smov %s897_s11  ;;  %s921_s21 = smov %s899_s21 }
 0x3b8   : > { %v933_v17 = vrot.slane %v932_v15, 4  ;;  %s967_s22 = sshrl.u32 (%p1692_p3), %s1678_s12, 3 }
 0x3b9   : > { %v914_v16 = vadd.f32 %v913_v13, %v912_v12  ;;  %s1502_s29 = sshll.u32 (%p1692_p3), %s967_s22, 3 }
 0x3ba   : > { %v934_v19 = vadd.f32 %v933_v17, %v932_v15  ;;  %s969_s24 = scalar_lea.vmem (%p1692_p3), %s1993_s4, %s1502_s29 }
 0x3bb   : > { %v915_v18 = vrot.slane %v914_v16, 2 }
 0x3bc   : > { %v935_v21 = vrot.slane %v934_v19, 2 }
 0x3bd   : > { %v916_v20 = vadd.f32 %v915_v18, %v914_v16 }
 0x3be   : > { %v936_v23 = vadd.f32 %v935_v21, %v934_v19  ;;  %966 = sbr.rel (!%p1692_p3) target bundleno = 972 (0x3cc), region = 174 }
 0x3bf   : > { %v917_v22 = vrot.slane %v916_v20, 1 }
 0x3c0   : > { %v937_v6 = vrot.slane %v936_v23, 1 }
 0x3c1   : > { %v918_v5 = vadd.f32 %v917_v22, %v916_v20 }
 0x3c2   : > { %v938_v24 = vadd.f32 %v937_v6, %v936_v23 }
 0x3c3   : > { %919 = vst [vmem:[%s901_s11] sm:$0x1] %v918_v5 }
 0x3c4   : > { %939 = vst [vmem:[%s921_s21] sm:$0x1] %v938_v24 }
 0x3ca   : > { %v997_v25 = vld [vmem:[%s283_s25] sm:$0xff] }
 0x3cb   : > { %998 = vst [vmem:[%s969_s24] sm:$0xff] %v997_v25 }
 0x3cc PF: > { %1004 = sbr.rel (!%p1692_p3) target bundleno = 980 (0x3d4), region = 212  ;;  %s1005_s28 = sshrl.u32 (%p1692_p3), %s1678_s12, 3 }
 0x3cd   : > { %s2003_s16 = scalar_lea.vmem (%p1692_p3), [#allocation5], %s1715_s18  ;;  %s1503_s15 = sshll.u32 (%p1692_p3), %s1005_s28, 3 }
 0x3ce   : > { %s1007_s25 = scalar_lea.vmem (%p1692_p3), %s1994_s5, %s1503_s15 }
 0x3d2   : > { %v1035_v26 = vld [vmem:[%s2003_s16] sm:$0xff] (%p1692_p3) }
 0x3d3   : > { %1036 = vst [vmem:[%s1007_s25] sm:$0xff] %v1035_v26 }
 0x3d4 PF: > { %s1504_s21 = sshll.u32 %s1678_s12, 3  ;;  %v1069_v27 = vld [vmem:[%s1721_s14] sm:$0xff]  ;;  %v1103_v28 = vld [vmem:[%s1724_s30] sm:$0xff] }
 0x3d5   : > { %v1137_v29 = vld [vmem:[%s1727_s17] sm:$0xff]  ;;  %s1041_s18 = scalar_lea.vmem %s1995_s6, %s1504_s21  ;;  %s1075_s26 = scalar_lea.vmem %s1996_s7, %s1504_s21  ;;  %v1171_v30 = vld [vmem:[%s1730_s20] sm:$0xff] }
 0x3d6   : > { %1070 = vst [vmem:[%s1041_s18] sm:$0xff] %v1069_v27  ;;  %1104 = vst [vmem:[%s1075_s26] sm:$0xff] %v1103_v28  ;;  %s1109_s16 = scalar_lea.vmem %s1997_s8, %s1504_s21  ;;  %s1143_s14 = scalar_lea.vmem %s1998_s9, %s1504_s21 }
 0x3d7   : > { %1138 = vst [vmem:[%s1109_s16] sm:$0xff] %v1137_v29  ;;  %1172 = vst [vmem:[%s1143_s14] sm:$0xff] %v1171_v30 }
 0x3d8 PF: > { %s2004_s17 = sld [smem:[#allocation23_spill]]  ;;  %p13_p13 = scmp.ge.s32.totalorder %s1681_s13, 10  }
 0x3d9   : > { %s2005_s30 = smov %s1595_s10  ;;  %s2007_s11 = smov %s1681_s13 }
 0x3da   :  { %15 = sbr.rel (!%p13_p13) target bundleno = 2 (0x2), region = 524 }
 0x3de   : > { %s2006_s10 = smov %s2004_s17 }

// kernel: spd_logistic_classifier.1
= control target key start
LH: loop header
LB: loop body
LE: loop exit
PB: predicated region body
PF: predicated region fallthrough
CT: control target
= control target key end

     0   :  { %vm29_vm0 = vcmask 654336   ;;  %vm211_vm1 = vcmask 64512   ;;  %s437_s1 = inlined_call_operand.vmem [shape: f32[80,80], index: 1, kind: input, shape index: {}]   ;;  %s438_s0 = inlined_call_operand.vmem [shape: f32[16,80], index: 0, kind: input, shape index: {}]   ;;  %s439_s2 = inlined_call_operand.vmem [shape: f32[80,8], index: 2, kind: input, shape index: {}]   ;;  %s440_s3 = inlined_call_operand.vmem [shape: f32[1,8], index: 3, kind: input, shape index: {}]   ;;  %s441_s4 = inlined_call_operand.vmem [shape: f32[16,8], index: 4, kind: output, shape index: {}]  }
   0x1   :  { %v19_v0 = vld [vmem:[%s437_s1] sm:$0xff]  ;;  %v20_v1 = vld [vmem:[%s437_s1 + $0x8] sm:$0xff]  ;;  %v21_v2 = vld [vmem:[%s437_s1 + $0x10] sm:$0xff] }
   0x2   :  { %v293_v3 = vpack.c.bf16 %v20_v1, %v19_v0  ;;  %v22_v4 = vld [vmem:[%s437_s1 + $0x18] sm:$0xff]  ;;  %v23_v6 = vld [vmem:[%s437_s1 + $0x20] sm:$0xff]  ;;  %v24_v7 = vld [vmem:[%s437_s1 + $0x28] sm:$0xff] }
   0x3   :  { %v297_v5 = vpack.c.bf16 %v22_v4, %v21_v2  ;;  %v17_v8 = vld [vmem:[%s438_s0] sm:$0xff]  ;;  %v114_v10 = vld [vmem:[%s439_s2 + $0x8] sm:$0xff]  ;;  %v115_v11 = vld [vmem:[%s439_s2 + $0x10] sm:$0xff]  ;;  %v301_v12 = vpack.c.bf16 %v24_v7, %v23_v6 }
   0x4   :  { %294 = vmatprep.subr.bf16.mxu0 %v293_v3  ;;  %267 = vmatprep.mubr.msk.f32.mxu0 %vm29_vm0, %v17_v8  ;;  %v113_v9 = vld [vmem:[%s439_s2] sm:$0xff]  ;;  %v25_v13 = vld [vmem:[%s437_s1 + $0x30] sm:$0xff]  ;;  %v116_v15 = vld [vmem:[%s439_s2 + $0x18] sm:$0xff] }
   0x5   :  { %296 = vmatpush3.bf16.msra.mxu0 %v293_v3  ;;  %v313_v14 = vpack.c.bf16 %v114_v10, %v113_v9  ;;  %v26_v16 = vld [vmem:[%s437_s1 + $0x38] sm:$0xff]  ;;  %v317_v17 = vpack.c.bf16 %v116_v15, %v115_v11  ;;  %v117_v18 = vld [vmem:[%s439_s2 + $0x20] sm:$0xff]  ;;  %v118_v19 = vld [vmem:[%s439_s2 + $0x28] sm:$0xff] }
   0x6   :  { %298 = vmatprep.subr.bf16.mxu0 %v297_v5  ;;  %v305_v20 = vpack.c.bf16 %v26_v16, %v25_v13  ;;  %v27_v21 = vld [vmem:[%s437_s1 + $0x40] sm:$0xff]  ;;  %v321_v22 = vpack.c.bf16 %v118_v19, %v117_v18  ;;  %v28_v23 = vld [vmem:[%s437_s1 + $0x48] sm:$0xff]  ;;  %v119_v24 = vld [vmem:[%s439_s2 + $0x30] sm:$0xff] }
   0x7   :  { %314 = vmatprep.subr.bf16.mxu1 %v313_v14  ;;  %v120_v25 = vld [vmem:[%s439_s2 + $0x38] sm:$0xff]  ;;  %v309_v26 = vpack.c.bf16 %v28_v23, %v27_v21  ;;  %v18_v28 = vld [vmem:[%s438_s0 + $0x8] sm:$0xff]  ;;  %v121_v29 = vld [vmem:[%s439_s2 + $0x40] sm:$0xff] }
   0x8   :  { %316 = vmatpush3.bf16.msra.mxu1 %v313_v14  ;;  %v325_v27 = vpack.c.bf16 %v120_v25, %v119_v24  ;;  %v122_v30 = vld [vmem:[%s439_s2 + $0x48] sm:$0xff]  ;;  %v220_v36 = vld [vmem:[%s440_s3] ss:$0 sm:$0xff] }
   0x9   :  { %300 = vmatpush3.bf16.msra.mxu0 %v297_v5  ;;  %318 = vmatprep.subr.bf16.mxu1 %v317_v17  ;;  %v329_v31 = vpack.c.bf16 %v122_v30, %v121_v29 }
   0xa   :  { %302 = vmatprep.subr.bf16.mxu0 %v301_v12 }
   0xc   :  { %320 = vmatpush3.bf16.msra.mxu1 %v317_v17 }
   0xd   :  { %304 = vmatpush3.bf16.msra.mxu0 %v301_v12  ;;  %322 = vmatprep.subr.bf16.mxu1 %v321_v22 }
   0xe   :  { %306 = vmatprep.subr.bf16.mxu0 %v305_v20 }
  0x10   :  { %324 = vmatpush3.bf16.msra.mxu1 %v321_v22 }
  0x11   :  { %308 = vmatpush3.bf16.msra.mxu0 %v305_v20  ;;  %326 = vmatprep.subr.bf16.mxu1 %v325_v27 }
  0x12   :  { %310 = vmatprep.subr.bf16.mxu0 %v309_v26 }
  0x14   :  { %328 = vmatpush3.bf16.msra.mxu1 %v325_v27 }
  0x15   :  { %312 = vmatpush3.bf16.msra.mxu0 %v309_v26  ;;  %330 = vmatprep.subr.bf16.mxu1 %v329_v31 }
  0x18   :  { %268 = vmatmul.mubr.msk.f32.vlgmr.msra.gmra.mrb[0].mxu0 %vm29_vm0, %v18_v28  ;;  %332 = vmatpush3.bf16.msra.mxu1 %v329_v31 }
  0xeb   :  { %v269_v32 = vpop.f32.mrb[0].mxu0 }
  0xec   :  { %v102_v33 = vpop.f32.mrb[1].mxu0  ;;  %v112_v35 = vmul.f32 %v269_v32, %v18_v28 }
  0xed   :  { %v111_v34 = vmul.f32 %v102_v33, %v17_v8 }
  0xef   :  { %290 = vmatprep.mubr.msk.f32.mxu1 %vm29_vm0, %v111_v34 }
  0xf0   :  { %291 = vmatmul.mubr.msk.f32.vlgmr.msra.gmra.mrb[0].mxu1 %vm29_vm0, %v112_v35 }
 0x1c3   :  { %v292_v37 = vpop.f32.mrb[0].mxu1 }
 0x1c4   :  { %v208_v38 = vadd.f32 %v292_v37, %v220_v36  ;;  %v202_v39 = vpop.f32.mrb[1].mxu1 }
 0x1c5   :  { %v203_v40 = vadd.f32 %v220_v36, %v202_v39 }
 0x1c6   :  { %213 = vst.msk [vmem:[%s441_s4 + $0x8] sm:$0xff] %vm211_vm1, %v208_v38 }
 0x1c7   :  { %212 = vst.msk [vmem:[%s441_s4] sm:$0xff] %vm211_vm1, %v203_v40 }

</bundles_post_ra>
